<compile_context>
chip_gen: v7x
topology: tpu7x:2x2x1
jax: 0.10.0
libtpu: 0.0.40
codegen_flags: <defaults>
</compile_context>

<pallas_src>
from functools import partial

import jax
import jax.numpy as jnp
from jax.experimental import pallas as pl
from jax.experimental.pallas import tpu as pltpu


# --------------------------------------------------------------------------- #
# Fused kernel: (norm + activation + zero-pad into VMEM) -> im2col -> MXU GEMM
# grid = (B, OH_tiles, Cout_tiles)
# --------------------------------------------------------------------------- #
def _conv2d_block_kernel(x_ref, scale_ref, shift_ref, alpha_ref, w_ref, b_ref,
                         o_ref, xpad_ref, patch_ref, *,
                         H, W, Cin, pad, KH, KW, stride, toh, ow, activation):
    t = pl.program_id(1)

    # ---------------------------------------------------------------- #
    # Once per batch element (first tile of this b): fused inference-BN
    # scale/shift + activation + zero padding written straight into the
    # VMEM scratch (never round-tripped through HBM).  VMEM-only writes,
    # once per image -> negligible next to the conv.
    # ---------------------------------------------------------------- #
    @pl.when(jnp.logical_and(t == 0, pl.program_id(2) == 0))
    def _fill_padded_activation():
        x = x_ref[0].astype(jnp.float32)                                 # (H, W, Cin)
        y = x * scale_ref[0].astype(jnp.float32) + shift_ref[0].astype(jnp.float32)
        if activation == "prelu":
            a = alpha_ref[0].astype(jnp.float32)                         # (Cin,)
            y = jnp.where(y >= 0.0, y, a * y)
        elif activation == "relu":
            y = jnp.maximum(y, 0.0)
        elif activation == "lrelu":
            y = jnp.where(y >= 0.0, y, 0.1 * y)
        elif activation == "tanh":
            y = jnp.tanh(y)
        elif activation == "sigmoid":
            y = jax.nn.sigmoid(y)
        elif activation == "none":
            pass
        else:  # guarded in the wrapper
            raise NotImplementedError(activation)
        y = y.astype(xpad_ref.dtype)
        if pad == 0:
            xpad_ref[...] = y
        else:
            xpad_ref[...] = jnp.zeros(xpad_ref.shape, xpad_ref.dtype)    # border
            xpad_ref[pad:pad + H, pad:pad + W, :] = y                    # interior

    # ---------------------------------------------------------------- #
    # Implicit GEMM: build the im2col patch (M, KH*KW*Cin) for this
    # output-row tile, then ONE MXU dot with the whole contraction
    # folded into K (instead of KH*KW tiny K=Cin dots).
    # ---------------------------------------------------------------- #
    m = toh * ow
    r_base = t * (toh * stride)
    for kh in range(KH):                                                 # static unroll
        rows = (pl.ds(r_base + kh, toh) if stride == 1
                else pl.ds(r_base + kh, toh, stride=stride))
        for kw in range(KW):
            cols = (pl.ds(kw, ow) if stride == 1
                    else pl.ds(kw, ow, stride=stride))
            win = xpad_ref[rows, cols, :]                                # (toh, ow, Cin)
            c0 = (kh * KW + kw) * Cin
            patch_ref[:, c0:c0 + Cin] = win.reshape(m, Cin)

    out = jax.lax.dot_general(
        patch_ref[...], w_ref[...],                                      # (M,K) x (K,TCO)
        dimension_numbers=(((1,), (0,)), ((), ())),
        preferred_element_type=jnp.float32)
    out = out + b_ref[...].astype(jnp.float32)                           # + (1, TCO) bias
    o_ref[...] = out.reshape(1, toh, ow, out.shape[-1]).astype(o_ref.dtype)


# --------------------------------------------------------------------------- #
# Tiling / budget helpers
# --------------------------------------------------------------------------- #
def _pick_row_tile(oh, ow, k_dim, itemsize, m_hi=1024, patch_budget=8 * 1024 * 1024):
    """Largest divisor of OH with M = TOH*OW <= 1024 and im2col patch within budget."""
    m_cap = max(8, min(m_hi, patch_budget // max(1, k_dim * itemsize)))
    best = 1
    for d in range(1, oh + 1):
        if oh % d == 0 and d * ow <= m_cap:
            best = d
    return best


def _vmem_limit_bytes():
    """Generation-aware scoped-VMEM limit (v5e/v6e: 128 MiB physical, v7x: 64 MiB)."""
    try:
        cap = int(pltpu.get_tpu_info().vmem_capacity_bytes)
    except Exception:
        cap = 64 * 1024 * 1024
    return int(min(int(0.75 * cap), 100 * 1024 * 1024))


# --------------------------------------------------------------------------- #
# Wrapper: Conv2dBlock.forward
# --------------------------------------------------------------------------- #
def conv2d_block(x_nchw, conv_weight, conv_bias=None,
                 bn_gamma=None, bn_beta=None,
                 bn_running_mean=None, bn_running_var=None, *,
                 stride=1, padding=0, norm="batch", activation="prelu",
                 prelu_alpha=0.25, eps=1e-5, row_tile=None, mxu_dtype=None):
    """x_nchw: (B, Cin, H, W); conv_weight: (Cout, Cin, KH, KW) -> (B, Cout, OH, OW)."""
    B, Cin, H, W = x_nchw.shape
    Cout, Cin2, KH, KW = conv_weight.shape
    assert Cin == Cin2

    if activation not in ("prelu", "relu", "lrelu", "tanh", "sigmoid", "none"):
        raise NotImplementedError(f"activation={activation}")

    # Fold the (inference-mode) norm into per-channel scale/shift.
    if norm == "batch":
        scale = (bn_gamma / jnp.sqrt(bn_running_var + eps)).astype(jnp.float32)
        shift = (bn_beta - bn_running_mean * scale).astype(jnp.float32)
    elif norm == "none":
        scale = jnp.ones((Cin,), jnp.float32)
        shift = jnp.zeros((Cin,), jnp.float32)
    else:
        raise NotImplementedError(f"norm={norm}")
    scale = scale.reshape(1, Cin)
    shift = shift.reshape(1, Cin)

    # PReLU slope: accepts a scalar or per-channel (Cin,) vector (nn.PReLU(num_parameters)).
    alpha = jnp.asarray(prelu_alpha, jnp.float32).reshape(-1)
    if alpha.shape[0] == 1:
        alpha = jnp.broadcast_to(alpha, (Cin,))
    assert alpha.shape[0] == Cin
    alpha = alpha.reshape(1, Cin)

    x_nhwc = jnp.transpose(x_nchw, (0, 2, 3, 1))          # layout plumbing only
    Hp, Wp = H + 2 * padding, W + 2 * padding
    OH = (Hp - KH) // stride + 1
    OW = (Wp - KW) // stride + 1

    # MXU operand dtype (optionally bf16 for 2x+ MXU throughput with f32 accumulation).
    compute_dtype = jnp.dtype(mxu_dtype) if mxu_dtype is not None else x_nhwc.dtype
    K = KH * KW * Cin

    # Weight -> (KH*KW*Cin, CoutP): the full contraction sits on the MXU K axis.
    # Only pad/tile Cout when it exceeds 128 lanes (keeps small-Cout writeback lean).
    if Cout > 128:
        CoutP = -(-Cout // 128) * 128
        TCO = 128
    else:
        CoutP, TCO = Cout, Cout
    n_j = CoutP // TCO
    w_r = jnp.transpose(conv_weight, (2, 3, 1, 0)).reshape(K, Cout)
    w_r = jnp.pad(w_r, ((0, 0), (0, CoutP - Cout))).astype(compute_dtype)
    if conv_bias is None:
        conv_bias = jnp.zeros((Cout,), jnp.float32)
    b_r = jnp.pad(conv_bias.astype(jnp.float32), (0, CoutP - Cout)).reshape(1, CoutP)

    # Output-row tile: target M = TOH*OW in the 256..1024 range (bounded by the
    # im2col patch VMEM budget).  User row_tile must divide OH, else auto-pick.
    itemsize = jnp.dtype(compute_dtype).itemsize
    if row_tile is not None and OH % int(row_tile) == 0:
        TOH = int(row_tile)
    else:
        TOH = _pick_row_tile(OH, OW, K, itemsize)
    n_t = OH // TOH

    flops = 2 * B * OH * OW * K * CoutP + 4 * B * H * W * Cin
    transcendentals = B * H * W * Cin if activation in ("tanh", "sigmoid") else 0
    bytes_accessed = (x_nhwc.size * x_nhwc.dtype.itemsize
                      + w_r.size * jnp.dtype(compute_dtype).itemsize + b_r.size * 4
                      + B * OH * OW * CoutP * x_nhwc.dtype.itemsize)

    out_nhwc = pl.pallas_call(
        partial(_conv2d_block_kernel, H=H, W=W, Cin=Cin, pad=padding,
                KH=KH, KW=KW, stride=stride, toh=TOH, ow=OW,
                activation=activation),
        out_shape=jax.ShapeDtypeStruct((B, OH, OW, CoutP), x_nhwc.dtype),
        grid_spec=pltpu.PrefetchScalarGridSpec(
            num_scalar_prefetch=0,
            grid=(B, n_t, n_j),
            in_specs=[
                # Full image per batch element; re-DMA'd only when b changes.
                pl.BlockSpec((1, H, W, Cin), lambda b, t, j: (b, 0, 0, 0)),
                pl.BlockSpec((1, Cin), lambda b, t, j: (0, 0)),
                pl.BlockSpec((1, Cin), lambda b, t, j: (0, 0)),
                pl.BlockSpec((1, Cin), lambda b, t, j: (0, 0)),
                pl.BlockSpec((K, TCO), lambda b, t, j: (0, j)),
                pl.BlockSpec((1, TCO), lambda b, t, j: (0, j)),
            ],
            out_specs=pl.BlockSpec((1, TOH, OW, TCO), lambda b, t, j: (b, t, 0, j)),
            scratch_shapes=[
                pltpu.VMEM((Hp, Wp, Cin), compute_dtype),      # padded activation (per b)
                pltpu.VMEM((TOH * OW, K), compute_dtype),      # im2col patch (per tile)
            ],
        ),
        compiler_params=pltpu.CompilerParams(
            # b is "parallel" (megacore sharding); t/j stay "arbitrary" so the per-image
            # padded-activation fill at (t==0, j==0) always runs before its tiles.
            dimension_semantics=("parallel", "arbitrary", "arbitrary"),
            vmem_limit_bytes=_vmem_limit_bytes(),
        ),
        cost_estimate=pl.CostEstimate(flops=flops, transcendentals=transcendentals,
                                      bytes_accessed=bytes_accessed),
    )(x_nhwc, scale, shift, alpha, w_r, b_r)

    out = out_nhwc if CoutP == Cout else out_nhwc[..., :Cout]
    return jnp.transpose(out, (0, 3, 1, 2))                # back to NCHW


# --------------------------------------------------------------------------- #
if __name__ == "__main__":
    key = jax.random.PRNGKey(0)
    ks = jax.random.split(key, 7)

    B, Cin, H, W = 2, 4, 16, 16
    Cout, KH, KW = 8, 3, 3
    stride, padding = 1, 1
    eps, alpha = 1e-5, 0.25

    x = jax.random.normal(ks[0], (B, Cin, H, W), jnp.float32)
    conv_w = 0.1 * jax.random.normal(ks[1], (Cout, Cin, KH, KW), jnp.float32)
    conv_b = 0.1 * jax.random.normal(ks[2], (Cout,), jnp.float32)
    gamma = 1.0 + 0.1 * jax.random.normal(ks[3], (Cin,), jnp.float32)
    beta = 0.1 * jax.random.normal(ks[4], (Cin,), jnp.float32)
    r_mean = 0.1 * jax.random.normal(ks[5], (Cin,), jnp.float32)
    r_var = 0.5 + 0.5 * jnp.abs(jax.random.normal(ks[6], (Cin,), jnp.float32))

    out = conv2d_block(x, conv_w, conv_b, gamma, beta, r_mean, r_var,
                       stride=stride, padding=padding,
                       norm="batch", activation="prelu", prelu_alpha=alpha)
    out = jax.block_until_ready(out)

    # Pure-JAX reference of the same forward pass (high-precision conv).
    xn = ((x - r_mean[None, :, None, None])
          / jnp.sqrt(r_var + eps)[None, :, None, None]
          * gamma[None, :, None, None] + beta[None, :, None, None])
    xa = jnp.where(xn >= 0, xn, alpha * xn)
    xp = jnp.pad(xa, ((0, 0), (0, 0), (padding, padding), (padding, padding)))
    ref = jax.lax.conv_general_dilated(
        xp, conv_w, (stride, stride), "VALID",
        dimension_numbers=("NCHW", "OIHW", "NCHW"),
        precision=jax.lax.Precision.HIGHEST) + conv_b[None, :, None, None]

    assert out.shape == ref.shape, (out.shape, ref.shape)
    max_err = float(jnp.max(jnp.abs(out - ref)))
    assert jnp.allclose(out, ref, atol=2e-3, rtol=2e-3), max_err
    print("KERNEL_OK")
</pallas_src>

<mosaic_0001>
module attributes {stable_mosaic.version = 11 : i64} {
  func.func @_conv2d_block_kernel(%arg0: i32, %arg1: i32, %arg2: i32, %arg3: memref<1x16x16x4xf32, #tpu.memory_space<vmem>>, %arg4: memref<1x4xf32, #tpu.memory_space<vmem>>, %arg5: memref<1x4xf32, #tpu.memory_space<vmem>>, %arg6: memref<1x4xf32, #tpu.memory_space<vmem>>, %arg7: memref<36x8xf32, #tpu.memory_space<vmem>>, %arg8: memref<1x8xf32, #tpu.memory_space<vmem>>, %arg9: memref<1x16x16x8xf32, #tpu.memory_space<vmem>>, %arg10: memref<18x18x4xf32, #tpu.memory_space<vmem>>, %arg11: memref<256x36xf32, #tpu.memory_space<vmem>>) attributes {dimension_semantics = [#tpu.dimension_semantics<parallel>, #tpu.dimension_semantics<arbitrary>, #tpu.dimension_semantics<arbitrary>], iteration_bounds = array<i64: 2, 1, 1>, scalar_prefetch = 0 : i64, scratch_operands = 2 : i64, tpu.core_type = #tpu.core_type<tc>, window_params = [{transform_indices = @transform_0, window_bounds = array<i64: 1, 16, 16, 4>}, {pipeline_mode = #tpu.pipeline_mode<synchronous>, transform_indices = @transform_1, window_bounds = array<i64: 1, 4>}, {pipeline_mode = #tpu.pipeline_mode<synchronous>, transform_indices = @transform_2, window_bounds = array<i64: 1, 4>}, {pipeline_mode = #tpu.pipeline_mode<synchronous>, transform_indices = @transform_3, window_bounds = array<i64: 1, 4>}, {transform_indices = @transform_4, window_bounds = array<i64: 36, 8>}, {transform_indices = @transform_5, window_bounds = array<i64: 1, 8>}, {transform_indices = @transform_6, window_bounds = array<i64: 1, 16, 16, 8>}]} {
    %c0_i32 = arith.constant 0 : i32
    %0 = arith.cmpi eq, %arg1, %c0_i32 : i32
    %c0_i32_0 = arith.constant 0 : i32
    %1 = arith.cmpi eq, %arg2, %c0_i32_0 : i32
    %2 = arith.andi %0, %1 : i1
    %3 = arith.extui %2 : i1 to i32
    %c0_i32_1 = arith.constant 0 : i32
    %4 = arith.cmpi ne, %3, %c0_i32_1 : i32
    scf.if %4 {
      %c0_38 = arith.constant 0 : index
      %c0_39 = arith.constant 0 : index
      %c0_40 = arith.constant 0 : index
      %c0_41 = arith.constant 0 : index
      %53 = vector.load %arg3[%c0_38, %c0_39, %c0_40, %c0_41] : memref<1x16x16x4xf32, #tpu.memory_space<vmem>>, vector<1x16x16x4xf32>
      %54 = vector.shape_cast %53 : vector<1x16x16x4xf32> to vector<16x16x4xf32>
      %c0_42 = arith.constant 0 : index
      %c0_43 = arith.constant 0 : index
      %55 = vector.load %arg4[%c0_42, %c0_43] : memref<1x4xf32, #tpu.memory_space<vmem>>, vector<1x4xf32>
      %56 = vector.shape_cast %55 : vector<1x4xf32> to vector<4xf32>
      %57 = vector.shape_cast %56 : vector<4xf32> to vector<1x1x4xf32>
      %58 = vector.broadcast %57 : vector<1x1x4xf32> to vector<16x16x4xf32>
      %59 = arith.mulf %54, %58 : vector<16x16x4xf32>
      %c0_44 = arith.constant 0 : index
      %c0_45 = arith.constant 0 : index
      %60 = vector.load %arg5[%c0_44, %c0_45] : memref<1x4xf32, #tpu.memory_space<vmem>>, vector<1x4xf32>
      %61 = vector.shape_cast %60 : vector<1x4xf32> to vector<4xf32>
      %62 = vector.shape_cast %61 : vector<4xf32> to vector<1x1x4xf32>
      %63 = vector.broadcast %62 : vector<1x1x4xf32> to vector<16x16x4xf32>
      %64 = arith.addf %59, %63 : vector<16x16x4xf32>
      %c0_46 = arith.constant 0 : index
      %c0_47 = arith.constant 0 : index
      %65 = vector.load %arg6[%c0_46, %c0_47] : memref<1x4xf32, #tpu.memory_space<vmem>>, vector<1x4xf32>
      %66 = vector.shape_cast %65 : vector<1x4xf32> to vector<4xf32>
      %cst_48 = arith.constant 0.000000e+00 : f32
      %67 = vector.broadcast %cst_48 : f32 to vector<16x16x4xf32>
      %68 = arith.cmpf oge, %64, %67 : vector<16x16x4xf32>
      %69 = vector.shape_cast %66 : vector<4xf32> to vector<1x1x4xf32>
      %70 = vector.broadcast %69 : vector<1x1x4xf32> to vector<16x16x4xf32>
      %71 = arith.mulf %70, %64 : vector<16x16x4xf32>
      %72 = arith.select %68, %64, %71 : vector<16x16x4xi1>, vector<16x16x4xf32>
      %cst_49 = arith.constant 0.000000e+00 : f32
      %73 = vector.broadcast %cst_49 : f32 to vector<18x18x4xf32>
      %c0_50 = arith.constant 0 : index
      %c0_51 = arith.constant 0 : index
      %c0_52 = arith.constant 0 : index
      %74 = vector.load %arg10[%c0_50, %c0_51, %c0_52] : memref<18x18x4xf32, #tpu.memory_space<vmem>>, vector<18x18x4xf32>
      tpu.vector_store %arg10[%c0_50, %c0_51, %c0_52], %73 {strides = array<i32>} : memref<18x18x4xf32, #tpu.memory_space<vmem>>, vector<18x18x4xf32>,
      %c1_53 = arith.constant 1 : index
      %c1_54 = arith.constant 1 : index
      %c0_55 = arith.constant 0 : index
      %75 = vector.load %arg10[%c1_53, %c1_54, %c0_55] : memref<18x18x4xf32, #tpu.memory_space<vmem>>, vector<16x16x4xf32>
      tpu.vector_store %arg10[%c1_53, %c1_54, %c0_55], %72 {strides = array<i32>} : memref<18x18x4xf32, #tpu.memory_space<vmem>>, vector<16x16x4xf32>,
    } else {
    }
    %c16_i32 = arith.constant 16 : i32
    %5 = arith.muli %arg1, %c16_i32 : i32
    %c0_i32_2 = arith.constant 0 : i32
    %6 = arith.addi %5, %c0_i32_2 : i32
    %7 = arith.index_cast %6 : i32 to index
    %c0 = arith.constant 0 : index
    %c0_3 = arith.constant 0 : index
    %8 = vector.load %arg10[%7, %c0, %c0_3] : memref<18x18x4xf32, #tpu.memory_space<vmem>>, vector<16x16x4xf32>
    %9 = vector.shape_cast %8 : vector<16x16x4xf32> to vector<256x4xf32>
    %c0_4 = arith.constant 0 : index
    %c0_5 = arith.constant 0 : index
    %10 = vector.load %arg11[%c0_4, %c0_5] : memref<256x36xf32, #tpu.memory_space<vmem>>, vector<256x4xf32>
    tpu.vector_store %arg11[%c0_4, %c0_5], %9 {strides = array<i32>} : memref<256x36xf32, #tpu.memory_space<vmem>>, vector<256x4xf32>,
    %11 = arith.index_cast %6 : i32 to index
    %c1 = arith.constant 1 : index
    %c0_6 = arith.constant 0 : index
    %12 = vector.load %arg10[%11, %c1, %c0_6] : memref<18x18x4xf32, #tpu.memory_space<vmem>>, vector<16x16x4xf32>
    %13 = vector.shape_cast %12 : vector<16x16x4xf32> to vector<256x4xf32>
    %c0_7 = arith.constant 0 : index
    %c4 = arith.constant 4 : index
    %14 = vector.load %arg11[%c0_7, %c4] : memref<256x36xf32, #tpu.memory_space<vmem>>, vector<256x4xf32>
    tpu.vector_store %arg11[%c0_7, %c4], %13 {strides = array<i32>} : memref<256x36xf32, #tpu.memory_space<vmem>>, vector<256x4xf32>,
    %15 = arith.index_cast %6 : i32 to index
    %c2 = arith.constant 2 : index
    %c0_8 = arith.constant 0 : index
    %16 = vector.load %arg10[%15, %c2, %c0_8] : memref<18x18x4xf32, #tpu.memory_space<vmem>>, vector<16x16x4xf32>
    %17 = vector.shape_cast %16 : vector<16x16x4xf32> to vector<256x4xf32>
    %c0_9 = arith.constant 0 : index
    %c8 = arith.constant 8 : index
    %18 = vector.load %arg11[%c0_9, %c8] : memref<256x36xf32, #tpu.memory_space<vmem>>, vector<256x4xf32>
    tpu.vector_store %arg11[%c0_9, %c8], %17 {strides = array<i32>} : memref<256x36xf32, #tpu.memory_space<vmem>>, vector<256x4xf32>,
    %c1_i32 = arith.constant 1 : i32
    %19 = arith.addi %5, %c1_i32 : i32
    %20 = arith.index_cast %19 : i32 to index
    %c0_10 = arith.constant 0 : index
    %c0_11 = arith.constant 0 : index
    %21 = vector.load %arg10[%20, %c0_10, %c0_11] : memref<18x18x4xf32, #tpu.memory_space<vmem>>, vector<16x16x4xf32>
    %22 = vector.shape_cast %21 : vector<16x16x4xf32> to vector<256x4xf32>
    %c0_12 = arith.constant 0 : index
    %c12 = arith.constant 12 : index
    %23 = vector.load %arg11[%c0_12, %c12] : memref<256x36xf32, #tpu.memory_space<vmem>>, vector<256x4xf32>
    tpu.vector_store %arg11[%c0_12, %c12], %22 {strides = array<i32>} : memref<256x36xf32, #tpu.memory_space<vmem>>, vector<256x4xf32>,
    %24 = arith.index_cast %19 : i32 to index
    %c1_13 = arith.constant 1 : index
    %c0_14 = arith.constant 0 : index
    %25 = vector.load %arg10[%24, %c1_13, %c0_14] : memref<18x18x4xf32, #tpu.memory_space<vmem>>, vector<16x16x4xf32>
    %26 = vector.shape_cast %25 : vector<16x16x4xf32> to vector<256x4xf32>
    %c0_15 = arith.constant 0 : index
    %c16 = arith.constant 16 : index
    %27 = vector.load %arg11[%c0_15, %c16] : memref<256x36xf32, #tpu.memory_space<vmem>>, vector<256x4xf32>
    tpu.vector_store %arg11[%c0_15, %c16], %26 {strides = array<i32>} : memref<256x36xf32, #tpu.memory_space<vmem>>, vector<256x4xf32>,
    %28 = arith.index_cast %19 : i32 to index
    %c2_16 = arith.constant 2 : index
    %c0_17 = arith.constant 0 : index
    %29 = vector.load %arg10[%28, %c2_16, %c0_17] : memref<18x18x4xf32, #tpu.memory_space<vmem>>, vector<16x16x4xf32>
    %30 = vector.shape_cast %29 : vector<16x16x4xf32> to vector<256x4xf32>
    %c0_18 = arith.constant 0 : index
    %c20 = arith.constant 20 : index
    %31 = vector.load %arg11[%c0_18, %c20] : memref<256x36xf32, #tpu.memory_space<vmem>>, vector<256x4xf32>
    tpu.vector_store %arg11[%c0_18, %c20], %30 {strides = array<i32>} : memref<256x36xf32, #tpu.memory_space<vmem>>, vector<256x4xf32>,
    %c2_i32 = arith.constant 2 : i32
    %32 = arith.addi %5, %c2_i32 : i32
    %33 = arith.index_cast %32 : i32 to index
    %c0_19 = arith.constant 0 : index
    %c0_20 = arith.constant 0 : index
    %34 = vector.load %arg10[%33, %c0_19, %c0_20] : memref<18x18x4xf32, #tpu.memory_space<vmem>>, vector<16x16x4xf32>
    %35 = vector.shape_cast %34 : vector<16x16x4xf32> to vector<256x4xf32>
    %c0_21 = arith.constant 0 : index
    %c24 = arith.constant 24 : index
    %36 = vector.load %arg11[%c0_21, %c24] : memref<256x36xf32, #tpu.memory_space<vmem>>, vector<256x4xf32>
    tpu.vector_store %arg11[%c0_21, %c24], %35 {strides = array<i32>} : memref<256x36xf32, #tpu.memory_space<vmem>>, vector<256x4xf32>,
    %37 = arith.index_cast %32 : i32 to index
    %c1_22 = arith.constant 1 : index
    %c0_23 = arith.constant 0 : index
    %38 = vector.load %arg10[%37, %c1_22, %c0_23] : memref<18x18x4xf32, #tpu.memory_space<vmem>>, vector<16x16x4xf32>
    %39 = vector.shape_cast %38 : vector<16x16x4xf32> to vector<256x4xf32>
    %c0_24 = arith.constant 0 : index
    %c28 = arith.constant 28 : index
    %40 = vector.load %arg11[%c0_24, %c28] : memref<256x36xf32, #tpu.memory_space<vmem>>, vector<256x4xf32>
    tpu.vector_store %arg11[%c0_24, %c28], %39 {strides = array<i32>} : memref<256x36xf32, #tpu.memory_space<vmem>>, vector<256x4xf32>,
    %41 = arith.index_cast %32 : i32 to index
    %c2_25 = arith.constant 2 : index
    %c0_26 = arith.constant 0 : index
    %42 = vector.load %arg10[%41, %c2_25, %c0_26] : memref<18x18x4xf32, #tpu.memory_space<vmem>>, vector<16x16x4xf32>
    %43 = vector.shape_cast %42 : vector<16x16x4xf32> to vector<256x4xf32>
    %c0_27 = arith.constant 0 : index
    %c32 = arith.constant 32 : index
    %44 = vector.load %arg11[%c0_27, %c32] : memref<256x36xf32, #tpu.memory_space<vmem>>, vector<256x4xf32>
    tpu.vector_store %arg11[%c0_27, %c32], %43 {strides = array<i32>} : memref<256x36xf32, #tpu.memory_space<vmem>>, vector<256x4xf32>,
    %c0_28 = arith.constant 0 : index
    %c0_29 = arith.constant 0 : index
    %45 = vector.load %arg11[%c0_28, %c0_29] : memref<256x36xf32, #tpu.memory_space<vmem>>, vector<256x36xf32>
    %c0_30 = arith.constant 0 : index
    %c0_31 = arith.constant 0 : index
    %46 = vector.load %arg7[%c0_30, %c0_31] : memref<36x8xf32, #tpu.memory_space<vmem>>, vector<36x8xf32>
    %cst = arith.constant dense<0.000000e+00> : vector<256x8xf32>
    %47 = tpu.matmul %45, %46, %cst {dimension_numbers = #tpu.dot_dimension_numbers<[1], [0], [0], [1], [0, 0, 1, 1], [], []>} : vector<256x36xf32>, vector<36x8xf32>, vector<256x8xf32> -> vector<256x8xf32>
    %c0_32 = arith.constant 0 : index
    %c0_33 = arith.constant 0 : index
    %48 = vector.load %arg8[%c0_32, %c0_33] : memref<1x8xf32, #tpu.memory_space<vmem>>, vector<1x8xf32>
    %49 = vector.broadcast %48 : vector<1x8xf32> to vector<256x8xf32>
    %50 = arith.addf %47, %49 : vector<256x8xf32>
    %51 = vector.shape_cast %50 : vector<256x8xf32> to vector<1x16x16x8xf32>
    %c0_34 = arith.constant 0 : index
    %c0_35 = arith.constant 0 : index
    %c0_36 = arith.constant 0 : index
    %c0_37 = arith.constant 0 : index
    %52 = vector.load %arg9[%c0_34, %c0_35, %c0_36, %c0_37] : memref<1x16x16x8xf32, #tpu.memory_space<vmem>>, vector<1x16x16x8xf32>
    tpu.vector_store %arg9[%c0_34, %c0_35, %c0_36, %c0_37], %51 {strides = array<i32>} : memref<1x16x16x8xf32, #tpu.memory_space<vmem>>, vector<1x16x16x8xf32>,
    return
  }
  func.func @transform_0(%arg0: i32, %arg1: i32, %arg2: i32) -> (i32, i32, i32, i32) {
    %c0_i32 = arith.constant 0 : i32
    %c0_i32_0 = arith.constant 0 : i32
    %c0_i32_1 = arith.constant 0 : i32
    %c0_i32_2 = arith.constant 0 : i32
    return %arg0, %c0_i32, %c0_i32_0, %c0_i32_1 : i32, i32, i32, i32
  }
  func.func @transform_1(%arg0: i32, %arg1: i32, %arg2: i32) -> (i32, i32) {
    %c0_i32 = arith.constant 0 : i32
    %c0_i32_0 = arith.constant 0 : i32
    %c0_i32_1 = arith.constant 0 : i32
    return %c0_i32, %c0_i32_0 : i32, i32
  }
  func.func @transform_2(%arg0: i32, %arg1: i32, %arg2: i32) -> (i32, i32) {
    %c0_i32 = arith.constant 0 : i32
    %c0_i32_0 = arith.constant 0 : i32
    %c0_i32_1 = arith.constant 0 : i32
    return %c0_i32, %c0_i32_0 : i32, i32
  }
  func.func @transform_3(%arg0: i32, %arg1: i32, %arg2: i32) -> (i32, i32) {
    %c0_i32 = arith.constant 0 : i32
    %c0_i32_0 = arith.constant 0 : i32
    %c0_i32_1 = arith.constant 0 : i32
    return %c0_i32, %c0_i32_0 : i32, i32
  }
  func.func @transform_4(%arg0: i32, %arg1: i32, %arg2: i32) -> (i32, i32) {
    %c0_i32 = arith.constant 0 : i32
    %c0_i32_0 = arith.constant 0 : i32
    return %c0_i32, %arg2 : i32, i32
  }
  func.func @transform_5(%arg0: i32, %arg1: i32, %arg2: i32) -> (i32, i32) {
    %c0_i32 = arith.constant 0 : i32
    %c0_i32_0 = arith.constant 0 : i32
    return %c0_i32, %arg2 : i32, i32
  }
  func.func @transform_6(%arg0: i32, %arg1: i32, %arg2: i32) -> (i32, i32, i32, i32) {
    %c0_i32 = arith.constant 0 : i32
    %c0_i32_0 = arith.constant 0 : i32
    return %arg0, %arg1, %c0_i32, %arg2 : i32, i32, i32, i32
  }
}

</mosaic_0001>

<bundles_post_ra>
// kernel: tpu_custom_call.1
= control target key start
LH: loop header
LB: loop body
LE: loop exit
PB: predicated region body
PF: predicated region fallthrough
CT: control target
= control target key end

     0   :  { %s3243_s21 = smov 0   ;;  %s3245_s22 = smov 0   ;;  %s4446_s0 = inlined_call_operand.vmem [shape: f32[2,16,16,4], index: 0, kind: input, shape index: {}]   ;;  %s4447_s1 = inlined_call_operand.vmem [shape: f32[1,4], index: 1, kind: input, shape index: {}]   ;;  %s4448_s2 = inlined_call_operand.vmem [shape: f32[1,4], index: 2, kind: input, shape index: {}]   ;;  %s4449_s3 = inlined_call_operand.vmem [shape: f32[1,4], index: 3, kind: input, shape index: {}]   ;;  %s4450_s4 = inlined_call_operand.vmem [shape: f32[36,8], index: 4, kind: input, shape index: {}]   ;;  %s4451_s5 = inlined_call_operand.vmem [shape: f32[1,8], index: 5, kind: input, shape index: {}]   ;;  %s4452_s6 = inlined_call_operand.vmem [shape: f32[2,16,16,8], index: 6, kind: output, shape index: {}]  }
   0x1   :  { %s3247_s23 = smov 0  }
   0x2 LB: > { %s35_s24 = sadd.s32 1, %s3193_s22  ;;  %p2795_p0 = scmp.ge.s32.totalorder %s3197_s23, 1  ;;  %s3197_s23 = sphi %s3247_s23, %s16_s23   ;;  %s3193_s22 = sphi %s3245_s22, %s4454_s22   ;;  %s3189_s21 = sphi %s3243_s21, %s4453_s21  }
   0x3   : > { %p37_p1 = scmp.ge.s32.totalorder %s35_s24, 2  ;;  %p252_p2 = scmp.lt.s32.totalorder %s3197_s23, 3 }
   0x5   : > { %s4456_s24 = smov (%p37_p1, %s35_s24), 0  ;;  %p253_p3 = pnand %p2795_p0, %p252_p2 }
   0x6   : > { %vm542_vm0 = vcmask (!%p253_p3), 31744   ;;  %p297_p4 = scmp.lt.s32.totalorder (!%p253_p3), %s3189_s21, 1  ;;  %v3199_v0 = vmov (!%p253_p3), 0.0   ;;  %vm545_vm1 = vcmask (!%p253_p3), 25600   ;;  %v3327_v1 = vld [vmem:[%s4447_s1] ss:$0 sm:$0xff] (!%p253_p3) }
   0x7   : > { %256 = sbr.rel (%p253_p3) target bundleno = 889 (0x379), region = 44  ;;  %543 = vst.msk [vmem:[#allocation2] sm:$0xff] (!%p253_p3), %vm542_vm0, %v3199_v0  ;;  %544 = vst.msk [vmem:[#allocation2 + $0x8] sm:$0xff] (!%p253_p3), %vm542_vm0, %v3199_v0  ;;  %v3339_v2 = vld [vmem:[%s4448_s2] ss:$0 sm:$0xff] (!%p253_p3)  ;;  %s3200_s11 = smov (!%p253_p3), 4  }
   0x8   : > { %547 = vst.msk [vmem:[#allocation2 + $0x18] sm:$0xff] (!%p253_p3), %vm542_vm0, %v3199_v0  ;;  %548 = vst.msk [vmem:[#allocation2 + $0x20] sm:$0xff] (!%p253_p3), %vm542_vm0, %v3199_v0  ;;  %v3345_v4 = vld [vmem:[%s4449_s3] ss:$0 sm:$0xff] (!%p253_p3)  ;;  %s3201_s12 = smov (!%p253_p3), 8   ;;  %s3202_s13 = smov (!%p253_p3), 12  }
   0x9   : > { %550 = vst.msk [vmem:[#allocation2 + $0x30] sm:$0xff] (!%p253_p3), %vm542_vm0, %v3199_v0  ;;  %551 = vst.msk [vmem:[#allocation2 + $0x38] sm:$0xff] (!%p253_p3), %vm542_vm0, %v3199_v0  ;;  %s3203_s14 = smov (!%p253_p3), 16   ;;  %s3204_s15 = smov (!%p253_p3), 20  }
   0xa   : > { %553 = vst.msk [vmem:[#allocation2 + $0x48] sm:$0xff] (!%p253_p3), %vm542_vm0, %v3199_v0  ;;  %554 = vst.msk [vmem:[#allocation2 + $0x50] sm:$0xff] (!%p253_p3), %vm542_vm0, %v3199_v0  ;;  %s3205_s16 = smov (!%p253_p3), 24   ;;  %s3206_s17 = smov (!%p253_p3), 28  }
   0xb   : > { %556 = vst.msk [vmem:[#allocation2 + $0x60] sm:$0xff] (!%p253_p3), %vm542_vm0, %v3199_v0  ;;  %557 = vst.msk [vmem:[#allocation2 + $0x68] sm:$0xff] (!%p253_p3), %vm542_vm0, %v3199_v0  ;;  %s3207_s18 = smov (!%p253_p3), 32  }
   0xc   : > { %559 = vst.msk [vmem:[#allocation2 + $0x78] sm:$0xff] (!%p253_p3), %vm542_vm0, %v3199_v0  ;;  %560 = vst.msk [vmem:[#allocation2 + $0x80] sm:$0xff] (!%p253_p3), %vm542_vm0, %v3199_v0 }
   0xd   : > { %562 = vst.msk [vmem:[#allocation2 + $0x90] sm:$0xff] (!%p253_p3), %vm542_vm0, %v3199_v0  ;;  %563 = vst.msk [vmem:[#allocation2 + $0x98] sm:$0xff] (!%p253_p3), %vm542_vm0, %v3199_v0 }
   0xe   : > { %565 = vst.msk [vmem:[#allocation2 + $0xa8] sm:$0xff] %vm542_vm0, %v3199_v0  ;;  %566 = vst.msk [vmem:[#allocation2 + $0xb0] sm:$0xff] %vm542_vm0, %v3199_v0  ;;  %s4458_s21 = smov (!%p297_p4, %s3189_s21), 1  ;;  %v699_v13 = vld [vmem:[#allocation2 + $0x1] sm:$0xff] }
   0xf   : > { %568 = vst.msk [vmem:[#allocation2 + $0xc0] sm:$0xff] %vm542_vm0, %v3199_v0  ;;  %569 = vst.msk [vmem:[#allocation2 + $0xc8] sm:$0xff] %vm542_vm0, %v3199_v0  ;;  %s3031_s25 = sshll.u32 %s4458_s21, 8  ;;  %763 = vrot.lane.b32.xlu0 %v699_v13, %s3200_s11  ;;  %v634_v54 = vld [vmem:[#allocation2] sm:$0xff]  ;;  %v635_v55 = vld [vmem:[#allocation2 + $0x8] sm:$0xff] }
  0x10   : > { %571 = vst.msk [vmem:[#allocation2 + $0xd8] sm:$0xff] %vm542_vm0, %v3199_v0  ;;  %572 = vst.msk [vmem:[#allocation2 + $0xe0] sm:$0xff] %vm542_vm0, %v3199_v0  ;;  %s3334_s30 = scalar_lea.vmem %s4446_s0, %s3031_s25 }
  0x11   : > { %574 = vst.msk [vmem:[#allocation2 + $0xf0] sm:$0xff] %vm542_vm0, %v3199_v0  ;;  %575 = vst.msk [vmem:[#allocation2 + $0xf8] sm:$0xff] %vm542_vm0, %v3199_v0  ;;  %v329_v3 = vld [vmem:[%s3334_s30] sm:$0xff]  ;;  %v330_v5 = vld [vmem:[%s3334_s30 + $0x8] sm:$0xff] }
  0x12   : > { %577 = vst.msk [vmem:[#allocation2 + $0x108] sm:$0xff] %vm542_vm0, %v3199_v0  ;;  %578 = vst.msk [vmem:[#allocation2 + $0x110] sm:$0xff] %vm542_vm0, %v3199_v0  ;;  %v331_v6 = vld [vmem:[%s3334_s30 + $0x10] sm:$0xff]  ;;  %v368_v7 = vmul.f32 %v3327_v1, %v329_v3  ;;  %v369_v8 = vmul.f32 %v3327_v1, %v330_v5  ;;  %v332_v10 = vld [vmem:[%s3334_s30 + $0x18] sm:$0xff] }
  0x13   : > { %580 = vst.msk [vmem:[#allocation2 + $0x120] sm:$0xff] %vm542_vm0, %v3199_v0  ;;  %581 = vst.msk [vmem:[#allocation2 + $0x128] sm:$0xff] %vm542_vm0, %v3199_v0  ;;  %v370_v9 = vmul.f32 %v3327_v1, %v331_v6  ;;  %v333_v11 = vld [vmem:[%s3334_s30 + $0x20] sm:$0xff]  ;;  %v334_v12 = vld [vmem:[%s3334_s30 + $0x28] sm:$0xff]  ;;  %v371_v14 = vmul.f32 %v3327_v1, %v332_v10 }
  0x14   : > { %583 = vst.msk [vmem:[#allocation2 + $0x138] sm:$0xff] %vm542_vm0, %v3199_v0  ;;  %584 = vst.msk [vmem:[#allocation2 + $0x140] sm:$0xff] %vm542_vm0, %v3199_v0  ;;  %v372_v15 = vmul.f32 %v3327_v1, %v333_v11  ;;  %v373_v16 = vmul.f32 %v3327_v1, %v334_v12  ;;  %v335_v17 = vld [vmem:[%s3334_s30 + $0x30] sm:$0xff]  ;;  %v336_v18 = vld [vmem:[%s3334_s30 + $0x38] sm:$0xff]  ;;  %v407_v19 = vadd.f32 %v3339_v2, %v368_v7 }
  0x15   : > { %586 = vst.msk [vmem:[#allocation2 + $0x150] sm:$0xff] %vm542_vm0, %v3199_v0  ;;  %587 = vst.msk [vmem:[#allocation2 + $0x158] sm:$0xff] %vm542_vm0, %v3199_v0  ;;  %v408_v20 = vadd.f32 %v3339_v2, %v369_v8  ;;  %v409_v21 = vadd.f32 %v3339_v2, %v370_v9  ;;  %v374_v22 = vmul.f32 %v3327_v1, %v335_v17  ;;  %v337_v32 = vld [vmem:[%s3334_s30 + $0x40] sm:$0xff]  ;;  %v338_v36 = vld [vmem:[%s3334_s30 + $0x48] sm:$0xff] }
  0x16   : > { %589 = vst.msk [vmem:[#allocation2 + $0x168] sm:$0xff] %vm542_vm0, %v3199_v0  ;;  %590 = vst.msk [vmem:[#allocation2 + $0x170] sm:$0xff] %vm542_vm0, %v3199_v0  ;;  %v410_v24 = vadd.f32 %v3339_v2, %v371_v14  ;;  %v411_v25 = vadd.f32 %v3339_v2, %v372_v15  ;;  %v412_v26 = vadd.f32 %v3339_v2, %v373_v16  ;;  %vm440_vm2 = vcmp.ge.f32.partialorder %v407_v19, 0.0  ;;  %v339_v37 = vld [vmem:[%s3334_s30 + $0x50] sm:$0xff]  ;;  %v340_v38 = vld [vmem:[%s3334_s30 + $0x58] sm:$0xff] }
  0x17   : > { %592 = vst.msk [vmem:[#allocation2 + $0x180] sm:$0xff] %vm542_vm0, %v3199_v0  ;;  %593 = vst.msk [vmem:[#allocation2 + $0x188] sm:$0xff] %vm542_vm0, %v3199_v0  ;;  %v375_v27 = vmul.f32 %v3327_v1, %v336_v18  ;;  %v478_v28 = vmul.f32 %v3345_v4, %v407_v19  ;;  %vm441_vm3 = vcmp.ge.f32.partialorder %v408_v20, 0.0  ;;  %v479_v29 = vmul.f32 %v3345_v4, %v408_v20  ;;  %v341_v50 = vld [vmem:[%s3334_s30 + $0x60] sm:$0xff]  ;;  %v342_v51 = vld [vmem:[%s3334_s30 + $0x68] sm:$0xff] }
  0x18   : > { %595 = vst.msk [vmem:[#allocation2 + $0x198] sm:$0xff] %vm542_vm0, %v3199_v0  ;;  %596 = vst.msk [vmem:[#allocation2 + $0x1a0] sm:$0xff] %vm542_vm0, %v3199_v0  ;;  %vm442_vm4 = vcmp.ge.f32.partialorder %v409_v21, 0.0  ;;  %v480_v30 = vmul.f32 %v3345_v4, %v409_v21  ;;  %vm443_vm5 = vcmp.ge.f32.partialorder %v410_v24, 0.0  ;;  %v481_v31 = vmul.f32 %v3345_v4, %v410_v24  ;;  %v343_v5 = vld [vmem:[%s3334_s30 + $0x70] sm:$0xff]  ;;  %v344_v6 = vld [vmem:[%s3334_s30 + $0x78] sm:$0xff] }
  0x19   : > { %546 = vst.msk [vmem:[#allocation2 + $0x10] sm:$0x3] %vm545_vm1, %v3199_v0  ;;  %549 = vst.msk [vmem:[#allocation2 + $0x28] sm:$0x3] %vm545_vm1, %v3199_v0  ;;  %v510_v33 = vsel %vm440_vm2, %v407_v19, %v478_v28  ;;  %v511_v34 = vsel %vm441_vm3, %v408_v20, %v479_v29  ;;  %vm444_vm6 = vcmp.ge.f32.partialorder %v411_v25, 0.0  ;;  %v482_v35 = vmul.f32 %v3345_v4, %v411_v25  ;;  %v345_v15 = vld [vmem:[%s3334_s30 + $0x80] sm:$0xff] }
  0x1a   : > { %552 = vst.msk [vmem:[#allocation2 + $0x40] sm:$0x3] %vm545_vm1, %v3199_v0  ;;  %555 = vst.msk [vmem:[#allocation2 + $0x58] sm:$0x3] %vm545_vm1, %v3199_v0  ;;  %v512_v39 = vsel %vm442_vm4, %v409_v21, %v480_v30  ;;  %v513_v40 = vsel %vm443_vm5, %v410_v24, %v481_v31  ;;  %vm445_vm7 = vcmp.ge.f32.partialorder %v412_v26, 0.0  ;;  %v483_v41 = vmul.f32 %v3345_v4, %v412_v26  ;;  %v346_v16 = vld [vmem:[%s3334_s30 + $0x88] sm:$0xff] }
  0x1b   : > { %558 = vst.msk [vmem:[#allocation2 + $0x70] sm:$0x3] %vm545_vm1, %v3199_v0  ;;  %561 = vst.msk [vmem:[#allocation2 + $0x88] sm:$0x3] %vm545_vm1, %v3199_v0  ;;  %v514_v42 = vsel %vm444_vm6, %v411_v25, %v482_v35  ;;  %v413_v43 = vadd.f32 %v3339_v2, %v374_v22  ;;  %v414_v44 = vadd.f32 %v3339_v2, %v375_v27  ;;  %v347_v22 = vld [vmem:[%s3334_s30 + $0x90] sm:$0xff]  ;;  %v349_v27 = vld [vmem:[%s3334_s30 + $0xa0] sm:$0xff] }
  0x1c   : > { %564 = vst.msk [vmem:[#allocation2 + $0xa0] sm:$0x3] %vm545_vm1, %v3199_v0  ;;  %567 = vst.msk [vmem:[#allocation2 + $0xb8] sm:$0x3] %vm545_vm1, %v3199_v0  ;;  %v376_v45 = vmul.f32 %v3327_v1, %v337_v32  ;;  %v515_v46 = vsel %vm445_vm7, %v412_v26, %v483_v41  ;;  %v377_v47 = vmul.f32 %v3327_v1, %v338_v36  ;;  %v350_v28 = vld [vmem:[%s3334_s30 + $0xa8] sm:$0xff] }
  0x1d   : > { %570 = vst.msk [vmem:[#allocation2 + $0xd0] sm:$0x3] %vm545_vm1, %v3199_v0  ;;  %573 = vst.msk [vmem:[#allocation2 + $0xe8] sm:$0x3] %vm545_vm1, %v3199_v0  ;;  %v378_v48 = vmul.f32 %v3327_v1, %v339_v37  ;;  %v379_v49 = vmul.f32 %v3327_v1, %v340_v38  ;;  %vm446_vm8 = vcmp.ge.f32.partialorder %v413_v43, 0.0  ;;  %v484_v52 = vmul.f32 %v3345_v4, %v413_v43 }
  0x1e   : > { %576 = vst.msk [vmem:[#allocation2 + $0x100] sm:$0x3] %vm545_vm1, %v3199_v0  ;;  %579 = vst.msk [vmem:[#allocation2 + $0x118] sm:$0x3] %vm545_vm1, %v3199_v0  ;;  %vm447_vm9 = vcmp.ge.f32.partialorder %v414_v44, 0.0  ;;  %v485_v53 = vmul.f32 %v3345_v4, %v414_v44  ;;  %v415_v56 = vadd.f32 %v3339_v2, %v376_v45  ;;  %v416_v57 = vadd.f32 %v3339_v2, %v377_v47 }
  0x1f   : > { %582 = vst.msk [vmem:[#allocation2 + $0x130] sm:$0x3] %vm545_vm1, %v3199_v0  ;;  %585 = vst.msk [vmem:[#allocation2 + $0x148] sm:$0x3] %vm545_vm1, %v3199_v0  ;;  %v417_v58 = vadd.f32 %v3339_v2, %v378_v48  ;;  %v418_v59 = vadd.f32 %v3339_v2, %v379_v49  ;;  %v516_v60 = vsel %vm446_vm8, %v413_v43, %v484_v52 }
  0x20   : > { %588 = vst.msk [vmem:[#allocation2 + $0x160] sm:$0x3] %vm545_vm1, %v3199_v0  ;;  %591 = vst.msk [vmem:[#allocation2 + $0x178] sm:$0x3] %vm545_vm1, %v3199_v0  ;;  %v700_v23 = vld [vmem:[#allocation2 + $0x9] sm:$0xff]  ;;  %v517_v61 = vsel %vm447_vm9, %v414_v44, %v485_v53  ;;  %v380_v62 = vmul.f32 %v3327_v1, %v341_v50  ;;  %v381_v63 = vmul.f32 %v3327_v1, %v342_v51  ;;  %vm448_vm10 = vcmp.ge.f32.partialorder %v415_v56, 0.0 }
  0x21   : > { %594 = vst.msk [vmem:[#allocation2 + $0x190] sm:$0x3] %vm545_vm1, %v3199_v0  ;;  %597 = vst.msk [vmem:[#allocation2 + $0x1a8] sm:$0x3] %vm545_vm1, %v3199_v0  ;;  %765 = vrot.lane.b32.xlu0 %v700_v23, %s3200_s11  ;;  %v486_v0 = vmul.f32 %v3345_v4, %v415_v56  ;;  %vm449_vm11 = vcmp.ge.f32.partialorder %v416_v57, 0.0  ;;  %v487_v3 = vmul.f32 %v3345_v4, %v416_v57  ;;  %vm450_vm12 = vcmp.ge.f32.partialorder %v417_v58, 0.0 }
  0x22   : > { %599 = vst.msk [vmem:[#allocation2 + $0x19] sm:$0xff] %vm542_vm0, %v510_v33  ;;  %600 = vst.msk [vmem:[#allocation2 + $0x21] sm:$0xff] %vm542_vm0, %v511_v34  ;;  %v488_v8 = vmul.f32 %v3345_v4, %v417_v58  ;;  %vm451_vm13 = vcmp.ge.f32.partialorder %v418_v59, 0.0  ;;  %v489_v9 = vmul.f32 %v3345_v4, %v418_v59  ;;  %v419_v13 = vadd.f32 %v3339_v2, %v380_v62  ;;  %v348_v23 = vld [vmem:[%s3334_s30 + $0x98] sm:$0xff] }
  0x23   : > { %601 = vst.msk [vmem:[#allocation2 + $0x31] sm:$0xff] %vm542_vm0, %v512_v39  ;;  %602 = vst.msk [vmem:[#allocation2 + $0x39] sm:$0xff] %vm542_vm0, %v513_v40  ;;  %v518_v11 = vsel %vm448_vm10, %v415_v56, %v486_v0  ;;  %v519_v12 = vsel %vm449_vm11, %v416_v57, %v487_v3  ;;  %v420_v14 = vadd.f32 %v3339_v2, %v381_v63  ;;  %v354_v3 = vld [vmem:[%s3334_s30 + $0xc8] sm:$0xff] }
  0x24   : > { %603 = vst.msk [vmem:[#allocation2 + $0x49] sm:$0xff] %vm542_vm0, %v514_v42  ;;  %604 = vst.msk [vmem:[#allocation2 + $0x51] sm:$0xff] %vm542_vm0, %v515_v46  ;;  %v520_v18 = vsel %vm450_vm12, %v417_v58, %v488_v8  ;;  %v521_v19 = vsel %vm451_vm13, %v418_v59, %v489_v9  ;;  %v382_v20 = vmul.f32 %v3327_v1, %v343_v5  ;;  %vm452_vm14 = vcmp.ge.f32.partialorder %v419_v13, 0.0  ;;  %v351_v59 = vld [vmem:[%s3334_s30 + $0xb0] sm:$0xff] }
  0x25   : > { %667 = vst.msk [vmem:[#allocation3] sm:$0xff] %vm542_vm0, %v634_v54  ;;  %668 = vst.msk [vmem:[#allocation3 + $0x8] sm:$0xff] %vm542_vm0, %v635_v55  ;;  %v383_v21 = vmul.f32 %v3327_v1, %v344_v6  ;;  %v490_v25 = vmul.f32 %v3345_v4, %v419_v13  ;;  %vm453_vm15 = vcmp.ge.f32.partialorder %v420_v14, 0.0  ;;  %v491_v26 = vmul.f32 %v3345_v4, %v420_v14  ;;  %v355_v5 = vld [vmem:[%s3334_s30 + $0xd0] sm:$0xff] }
  0x26   : > { %605 = vst.msk [vmem:[#allocation2 + $0x61] sm:$0xff] %vm542_vm0, %v516_v60  ;;  %606 = vst.msk [vmem:[#allocation2 + $0x69] sm:$0xff] %vm542_vm0, %v517_v61  ;;  %v421_v29 = vadd.f32 %v3339_v2, %v382_v20  ;;  %v384_v31 = vmul.f32 %v3327_v1, %v345_v15  ;;  %v385_v32 = vmul.f32 %v3327_v1, %v346_v16  ;;  %v352_v60 = vld [vmem:[%s3334_s30 + $0xb8] sm:$0xff]  ;;  %v353_v61 = vld [vmem:[%s3334_s30 + $0xc0] sm:$0xff] }
  0x27   : > { %607 = vst.msk [vmem:[#allocation2 + $0x79] sm:$0xff] %vm542_vm0, %v518_v11  ;;  %608 = vst.msk [vmem:[#allocation2 + $0x81] sm:$0xff] %vm542_vm0, %v519_v12  ;;  %v422_v30 = vadd.f32 %v3339_v2, %v383_v21  ;;  %v522_v36 = vsel %vm452_vm14, %v419_v13, %v490_v25  ;;  %v523_v37 = vsel %vm453_vm15, %v420_v14, %v491_v26  ;;  %v356_v11 = vld [vmem:[%s3334_s30 + $0xd8] sm:$0xff] }
  0x28   : > { %609 = vst.msk [vmem:[#allocation2 + $0x91] sm:$0xff] %vm542_vm0, %v520_v18  ;;  %610 = vst.msk [vmem:[#allocation2 + $0x99] sm:$0xff] %vm542_vm0, %v521_v19  ;;  %v386_v38 = vmul.f32 %v3327_v1, %v347_v22  ;;  %v387_v39 = vmul.f32 %v3327_v1, %v348_v23  ;;  %vm454_vm1 = vcmp.ge.f32.partialorder %v421_v29, 0.0  ;;  %v492_v44 = vmul.f32 %v3345_v4, %v421_v29 }
  0x29   : > { %v701_v7 = vld [vmem:[#allocation2 + $0x19] sm:$0xff]  ;;  %v702_v17 = vld [vmem:[#allocation2 + $0x21] sm:$0xff]  ;;  %611 = vst.msk [vmem:[#allocation2 + $0xa9] sm:$0xff] %vm542_vm0, %v522_v36  ;;  %612 = vst.msk [vmem:[#allocation2 + $0xb1] sm:$0xff] %vm542_vm0, %v523_v37  ;;  %vm455_vm2 = vcmp.ge.f32.partialorder %v422_v30, 0.0  ;;  %v493_v45 = vmul.f32 %v3345_v4, %v422_v30  ;;  %v423_v47 = vadd.f32 %v3339_v2, %v384_v31  ;;  %v424_v48 = vadd.f32 %v3339_v2, %v385_v32 }
  0x2a   : > { %767 = vrot.lane.b32.xlu1 %v701_v7, %s3200_s11  ;;  %v703_v10 = vld [vmem:[#allocation2 + $0x31] sm:$0xff]  ;;  %v3437_v34 = vld [vmem:[#allocation2 + $0x20] sm:$0xff]  ;;  %v425_v49 = vadd.f32 %v3339_v2, %v386_v38  ;;  %v426_v50 = vadd.f32 %v3339_v2, %v387_v39  ;;  %v524_v53 = vsel %vm454_vm1, %v421_v29, %v492_v44  ;;  %v388_v55 = vmul.f32 %v3327_v1, %v349_v27  ;;  %v358_v38 = vld [vmem:[%s3334_s30 + $0xe8] sm:$0xff] }
  0x2b   : > { %771 = vrot.lane.b32.xlu0 %v703_v10, %s3200_s11  ;;  %v705_v24 = vld [vmem:[#allocation2 + $0x49] sm:$0xff]  ;;  %v3435_v33 = vld [vmem:[#allocation2 + $0x18] sm:$0xff]  ;;  %670 = vst.msk [vmem:[#allocation3 + $0x18] sm:$0xff] %vm542_vm0, %v3437_v34  ;;  %v525_v54 = vsel %vm455_vm2, %v422_v30, %v493_v45  ;;  %v389_v56 = vmul.f32 %v3327_v1, %v350_v28  ;;  %613 = vst.msk [vmem:[#allocation2 + $0xc1] sm:$0xff] %vm542_vm0, %v524_v53  ;;  %vm456_vm3 = vcmp.ge.f32.partialorder %v423_v47, 0.0  ;;  %vm457_vm4 = vcmp.ge.f32.partialorder %v424_v48, 0.0 }
  0x2c   : > { %v3439_v35 = vld [vmem:[#allocation2 + $0x30] sm:$0xff]  ;;  %669 = vst.msk [vmem:[#allocation3 + $0x10] sm:$0xff] %vm542_vm0, %v3435_v33  ;;  %v3450_v40 = vld [vmem:[#allocation2 + $0x38] sm:$0xff]  ;;  %v3452_v41 = vld [vmem:[#allocation2 + $0x48] sm:$0xff]  ;;  %v494_v57 = vmul.f32 %v3345_v4, %v423_v47  ;;  %v495_v58 = vmul.f32 %v3345_v4, %v424_v48  ;;  %vm458_vm5 = vcmp.ge.f32.partialorder %v425_v49, 0.0  ;;  %v496_v63 = vmul.f32 %v3345_v4, %v425_v49 }
  0x2d   : > { %671 = vst.msk [vmem:[#allocation3 + $0x20] sm:$0xff] %vm542_vm0, %v3439_v35  ;;  %v3454_v42 = vld [vmem:[#allocation2 + $0x50] sm:$0xff]  ;;  %v704_v43 = vld [vmem:[#allocation2 + $0x39] sm:$0xff]  ;;  %672 = vst.msk [vmem:[#allocation3 + $0x28] sm:$0xff] %vm542_vm0, %v3450_v40  ;;  %vm459_vm6 = vcmp.ge.f32.partialorder %v426_v50, 0.0  ;;  %v497_v0 = vmul.f32 %v3345_v4, %v426_v50  ;;  %v427_v9 = vadd.f32 %v3339_v2, %v388_v55  ;;  %v428_v10 = vadd.f32 %v3339_v2, %v389_v56 }
  0x2e   : > { %769 = vrot.lane.b32.xlu1 %v702_v17, %s3200_s11  ;;  %673 = vst.msk [vmem:[#allocation3 + $0x30] sm:$0xff] %vm542_vm0, %v3452_v41  ;;  %674 = vst.msk [vmem:[#allocation3 + $0x38] sm:$0xff] %vm542_vm0, %v3454_v42  ;;  %v707_v46 = vld [vmem:[#allocation2 + $0x61] sm:$0xff]  ;;  %v706_v62 = vld [vmem:[#allocation2 + $0x51] sm:$0xff]  ;;  %v526_v7 = vsel %vm456_vm3, %v423_v47, %v494_v57  ;;  %v527_v8 = vsel %vm457_vm4, %v424_v48, %v495_v58  ;;  %v528_v13 = vsel %vm458_vm5, %v425_v49, %v496_v63  ;;  %vm1052_vm4 = vcmask 97344  }
  0x2f   : > { %775 = vrot.lane.b32.xlu0 %v705_v24, %s3200_s11  ;;  %v3471_v51 = vld [vmem:[#allocation2 + $0x60] sm:$0xff]  ;;  %v3473_v52 = vld [vmem:[#allocation2 + $0x68] sm:$0xff]  ;;  %614 = vst.msk [vmem:[#allocation2 + $0xc9] sm:$0xff] %vm542_vm0, %v525_v54  ;;  %v3498_v12 = vld [vmem:[#allocation2 + $0x78] sm:$0xff]  ;;  %v529_v14 = vsel %vm459_vm6, %v426_v50, %v497_v0  ;;  %v390_v15 = vmul.f32 %v3327_v1, %v351_v59  ;;  %v391_v16 = vmul.f32 %v3327_v1, %v352_v60  ;;  %vm460_vm7 = vcmp.ge.f32.partialorder %v427_v9, 0.0 }
  0x30   : > { %675 = vst.msk [vmem:[#allocation3 + $0x40] sm:$0xff] %vm542_vm0, %v3471_v51  ;;  %676 = vst.msk [vmem:[#allocation3 + $0x48] sm:$0xff] %vm542_vm0, %v3473_v52  ;;  %v709_v6 = vld [vmem:[#allocation2 + $0x79] sm:$0xff]  ;;  %v3508_v18 = vld [vmem:[#allocation2 + $0x90] sm:$0xff]  ;;  %v498_v20 = vmul.f32 %v3345_v4, %v427_v9  ;;  %vm461_vm8 = vcmp.ge.f32.partialorder %v428_v10, 0.0  ;;  %v499_v21 = vmul.f32 %v3345_v4, %v428_v10  ;;  %v392_v25 = vmul.f32 %v3327_v1, %v353_v61 }
  0x31   : > { %615 = vst.msk [vmem:[#allocation2 + $0xd9] sm:$0xff] %vm542_vm0, %v526_v7  ;;  %616 = vst.msk [vmem:[#allocation2 + $0xe1] sm:$0xff] %vm542_vm0, %v527_v8  ;;  %v3506_v17 = vld [vmem:[#allocation2 + $0x80] sm:$0xff]  ;;  %v3510_v19 = vld [vmem:[#allocation2 + $0x98] sm:$0xff]  ;;  %v429_v23 = vadd.f32 %v3339_v2, %v390_v15  ;;  %v430_v24 = vadd.f32 %v3339_v2, %v391_v16  ;;  %v393_v26 = vmul.f32 %v3327_v1, %v354_v3  ;;  %vm2390_vm5 = vcmask 1043456  }
  0x32   : > { %773 = vrot.lane.b32.xlu1 %v704_v43, %s3200_s11  ;;  %677 = vst.msk [vmem:[#allocation3 + $0x50] sm:$0xff] %vm542_vm0, %v3498_v12  ;;  %617 = vst.msk [vmem:[#allocation2 + $0xf1] sm:$0xff] %vm542_vm0, %v528_v13  ;;  %v708_v22 = vld [vmem:[#allocation2 + $0x69] sm:$0xff]  ;;  %v711_v29 = vld [vmem:[#allocation2 + $0x91] sm:$0xff]  ;;  %v530_v30 = vsel %vm460_vm7, %v427_v9, %v498_v20  ;;  %v531_v31 = vsel %vm461_vm8, %v428_v10, %v499_v21  ;;  %v394_v32 = vmul.f32 %v3327_v1, %v355_v5  ;;  %vm1248_vm6 = vcmask 130144  }
  0x33   : > { %779 = vrot.lane.b32.xlu0 %v707_v46, %s3200_s11  ;;  %618 = vst.msk [vmem:[#allocation2 + $0xf9] sm:$0xff] %vm542_vm0, %v529_v14  ;;  %678 = vst.msk [vmem:[#allocation3 + $0x58] sm:$0xff] %vm542_vm0, %v3506_v17  ;;  %v3528_v27 = vld [vmem:[#allocation2 + $0xa8] sm:$0xff]  ;;  %v3530_v28 = vld [vmem:[#allocation2 + $0xb0] sm:$0xff]  ;;  %v395_v36 = vmul.f32 %v3327_v1, %v356_v11  ;;  %vm462_vm9 = vcmp.ge.f32.partialorder %v429_v23, 0.0  ;;  %v500_v39 = vmul.f32 %v3345_v4, %v429_v23  ;;  %vm463_vm10 = vcmp.ge.f32.partialorder %v430_v24, 0.0 }
  0x34   : > { %679 = vst.msk [vmem:[#allocation3 + $0x60] sm:$0xff] %vm542_vm0, %v3508_v18  ;;  %680 = vst.msk [vmem:[#allocation3 + $0x68] sm:$0xff] %vm542_vm0, %v3510_v19  ;;  %v357_v37 = vld [vmem:[%s3334_s30 + $0xe0] sm:$0xff]  ;;  %v501_v43 = vmul.f32 %v3345_v4, %v430_v24  ;;  %v431_v44 = vadd.f32 %v3339_v2, %v392_v25  ;;  %v432_v45 = vadd.f32 %v3339_v2, %v393_v26  ;;  %v713_v57 = vld [vmem:[#allocation2 + $0xa9] sm:$0xff]  ;;  %vm1441_vm7 = vcmask 162944  }
  0x35   : > { %681 = vst.msk [vmem:[#allocation3 + $0x70] sm:$0xff] %vm542_vm0, %v3528_v27  ;;  %682 = vst.msk [vmem:[#allocation3 + $0x78] sm:$0xff] %vm542_vm0, %v3530_v28  ;;  %v433_v46 = vadd.f32 %v3339_v2, %v394_v32  ;;  %v434_v47 = vadd.f32 %v3339_v2, %v395_v36  ;;  %v3550_v48 = vld [vmem:[#allocation2 + $0xc0] sm:$0xff]  ;;  %v532_v53 = vsel %vm462_vm9, %v429_v23, %v500_v39  ;;  %v714_v21 = vld [vmem:[#allocation2 + $0xb1] sm:$0xff]  ;;  %vm1634_vm8 = vcmask 195744  }
  0x36   : > { %777 = vrot.lane.b32.xlu1 %v706_v62, %s3200_s11  ;;  %619 = vst.msk [vmem:[#allocation2 + $0x109] sm:$0xff] %vm542_vm0, %v530_v30  ;;  %620 = vst.msk [vmem:[#allocation2 + $0x111] sm:$0xff] %vm542_vm0, %v531_v31  ;;  %v3552_v49 = vld [vmem:[#allocation2 + $0xc8] sm:$0xff]  ;;  %v533_v54 = vsel %vm463_vm10, %v430_v24, %v501_v43  ;;  %v396_v55 = vmul.f32 %v3327_v1, %v357_v37  ;;  %v397_v56 = vmul.f32 %v3327_v1, %v358_v38  ;;  %vm1830_vm9 = vcmask 228544  }
  0x37   : > { %783 = vrot.lane.b32.xlu0 %v709_v6, %s3200_s11  ;;  %v710_v50 = vld [vmem:[#allocation2 + $0x81] sm:$0xff]  ;;  %683 = vst.msk [vmem:[#allocation3 + $0x80] sm:$0xff] %vm542_vm0, %v3550_v48  ;;  %684 = vst.msk [vmem:[#allocation3 + $0x88] sm:$0xff] %vm542_vm0, %v3552_v49  ;;  %vm464_vm11 = vcmp.ge.f32.partialorder %v431_v44, 0.0  ;;  %v502_v58 = vmul.f32 %v3345_v4, %v431_v44  ;;  %vm465_vm12 = vcmp.ge.f32.partialorder %v432_v45, 0.0  ;;  %v503_v59 = vmul.f32 %v3345_v4, %v432_v45  ;;  %v712_v6 = vld [vmem:[#allocation2 + $0x99] sm:$0xff] }
  0x38   : > { %621 = vst.msk [vmem:[#allocation2 + $0x121] sm:$0xff] %vm542_vm0, %v532_v53  ;;  %622 = vst.msk [vmem:[#allocation2 + $0x129] sm:$0xff] %vm542_vm0, %v533_v54  ;;  %vm466_vm13 = vcmp.ge.f32.partialorder %v433_v46, 0.0  ;;  %v504_v60 = vmul.f32 %v3345_v4, %v433_v46  ;;  %vm467_vm14 = vcmp.ge.f32.partialorder %v434_v47, 0.0  ;;  %v505_v61 = vmul.f32 %v3345_v4, %v434_v47  ;;  %v3570_v5 = vld [vmem:[#allocation2 + $0xd8] sm:$0xff]  ;;  %v3577_v9 = vld [vmem:[#allocation2 + $0xe0] sm:$0xff] }
  0x39   : > { %v534_v62 = vsel %vm464_vm11, %v431_v44, %v502_v58  ;;  %v535_v63 = vsel %vm465_vm12, %v432_v45, %v503_v59  ;;  %v435_v0 = vadd.f32 %v3339_v2, %v396_v55  ;;  %v436_v3 = vadd.f32 %v3339_v2, %v397_v56  ;;  %685 = vst.msk [vmem:[#allocation3 + $0x90] sm:$0xff] %vm542_vm0, %v3570_v5  ;;  %v715_v10 = vld [vmem:[#allocation2 + $0xc1] sm:$0xff]  ;;  %v3586_v16 = vld [vmem:[#allocation2 + $0xf0] sm:$0xff]  ;;  %v360_v55 = vld [vmem:[%s3334_s30 + $0xf8] sm:$0xff] }
  0x3a   : > { %781 = vrot.lane.b32.xlu1 %v708_v22, %s3200_s11  ;;  %623 = vst.msk [vmem:[#allocation2 + $0x139] sm:$0xff] %vm542_vm0, %v534_v62  ;;  %624 = vst.msk [vmem:[#allocation2 + $0x141] sm:$0xff] %vm542_vm0, %v535_v63  ;;  %v536_v7 = vsel %vm466_vm13, %v433_v46, %v504_v60  ;;  %v537_v8 = vsel %vm467_vm14, %v434_v47, %v505_v61  ;;  %v3588_v20 = vld [vmem:[#allocation2 + $0xf8] sm:$0xff]  ;;  %v716_v23 = vld [vmem:[#allocation2 + $0xc9] sm:$0xff]  ;;  %vm2023_vm10 = vcmask 261344   ;;  %vm2216_vm11 = vcmask 294144  }
  0x3b   : > { %787 = vrot.lane.b32.xlu0 %v711_v29, %s3200_s11  ;;  %625 = vst.msk [vmem:[#allocation2 + $0x151] sm:$0xff] %vm542_vm0, %v536_v7  ;;  %626 = vst.msk [vmem:[#allocation2 + $0x159] sm:$0xff] %vm542_vm0, %v537_v8  ;;  %vm468_vm15 = vcmp.ge.f32.partialorder %v435_v0, 0.0  ;;  %v506_v11 = vmul.f32 %v3345_v4, %v435_v0  ;;  %vm469_vm1 = vcmp.ge.f32.partialorder %v436_v3, 0.0  ;;  %v507_v13 = vmul.f32 %v3345_v4, %v436_v3  ;;  %v3597_v22 = vld [vmem:[#allocation2 + $0xd9] sm:$0xff]  ;;  %v3602_v24 = vld [vmem:[#allocation2 + $0xf1] sm:$0xff] }
  0x3c   : > { %686 = vst.msk [vmem:[#allocation3 + $0x98] sm:$0xff] %vm542_vm0, %v3577_v9  ;;  %687 = vst.msk [vmem:[#allocation3 + $0xa0] sm:$0xff] %vm542_vm0, %v3586_v16  ;;  %v3613_v29 = vld [vmem:[#allocation2 + $0xe1] sm:$0xff]  ;;  %v3633_v38 = vld [vmem:[#allocation2 + $0xf9] sm:$0xff]  ;;  %vm2293_vm12 = vcmask 293888   ;;  %vm2619_vm13 = vcmask 64512  }
  0x3d   : > { %v538_v14 = vsel %vm468_vm15, %v435_v0, %v506_v11  ;;  %v539_v15 = vsel %vm469_vm1, %v436_v3, %v507_v13  ;;  %688 = vst.msk [vmem:[#allocation3 + $0xa8] sm:$0xff] %vm542_vm0, %v3588_v20  ;;  %v3604_v25 = vld [vmem:[#allocation2 + $0x108] sm:$0xff]  ;;  %v3608_v26 = vld [vmem:[#allocation2 + $0x110] sm:$0xff] }
  0x3e   : > { %785 = vrot.lane.b32.xlu1 %v710_v50, %s3200_s11  ;;  %627 = vst.msk [vmem:[#allocation2 + $0x169] sm:$0xff] %vm542_vm0, %v538_v14  ;;  %628 = vst.msk [vmem:[#allocation2 + $0x171] sm:$0xff] %vm542_vm0, %v539_v15  ;;  %v3621_v32 = vld [vmem:[#allocation2 + $0x109] sm:$0xff]  ;;  %v722_v45 = vld [vmem:[#allocation2 + $0x111] sm:$0xff] }
  0x3f   : > { %791 = vrot.lane.b32.xlu0 %v713_v57, %s3200_s11  ;;  %689 = vst.msk [vmem:[#allocation3 + $0xb0] sm:$0xff] %vm542_vm0, %v3604_v25  ;;  %690 = vst.msk [vmem:[#allocation3 + $0xb8] sm:$0xff] %vm542_vm0, %v3608_v26  ;;  %v3617_v30 = vld [vmem:[#allocation2 + $0x120] sm:$0xff]  ;;  %v3619_v31 = vld [vmem:[#allocation2 + $0x128] sm:$0xff]  ;;  %v399_v57 = vmul.f32 %v3327_v1, %v360_v55 }
  0x40   : > { %691 = vst.msk [vmem:[#allocation3 + $0xc0] sm:$0xff] %vm542_vm0, %v3617_v30  ;;  %692 = vst.msk [vmem:[#allocation3 + $0xc8] sm:$0xff] %vm542_vm0, %v3619_v31  ;;  %v723_v39 = vld [vmem:[#allocation2 + $0x121] sm:$0xff]  ;;  %v359_v47 = vld [vmem:[%s3334_s30 + $0xf0] sm:$0xff] }
  0x41   : > { %v3629_v36 = vld [vmem:[#allocation2 + $0x138] sm:$0xff]  ;;  %v3631_v37 = vld [vmem:[#allocation2 + $0x140] sm:$0xff]  ;;  %v398_v54 = vmul.f32 %v3327_v1, %v359_v47  ;;  %v724_v56 = vld [vmem:[#allocation2 + $0x129] sm:$0xff]  ;;  %v438_v60 = vadd.f32 %v3339_v2, %v399_v57 }
  0x42   : > { %789 = vrot.lane.b32.xlu1 %v712_v6, %s3200_s11  ;;  %693 = vst.msk [vmem:[#allocation3 + $0xd0] sm:$0xff] %vm542_vm0, %v3629_v36  ;;  %694 = vst.msk [vmem:[#allocation3 + $0xd8] sm:$0xff] %vm542_vm0, %v3631_v37  ;;  %v3643_v43 = vld [vmem:[#allocation2 + $0x150] sm:$0xff]  ;;  %v3645_v44 = vld [vmem:[#allocation2 + $0x158] sm:$0xff] }
  0x43   : > { %795 = vrot.lane.b32.xlu0 %v715_v10, %s3200_s11  ;;  %695 = vst.msk [vmem:[#allocation3 + $0xe0] sm:$0xff] %vm542_vm0, %v3643_v43  ;;  %696 = vst.msk [vmem:[#allocation3 + $0xe8] sm:$0xff] %vm542_vm0, %v3645_v44  ;;  %v725_v46 = vld [vmem:[#allocation2 + $0x139] sm:$0xff]  ;;  %v727_v58 = vld [vmem:[#allocation2 + $0x151] sm:$0xff]  ;;  %v437_v59 = vadd.f32 %v3339_v2, %v398_v54  ;;  %v509_v63 = vmul.f32 %v3345_v4, %v438_v60  ;;  %vm471_vm3 = vcmp.ge.f32.partialorder %v438_v60, 0.0 }
  0x44   : > { %v726_v62 = vld [vmem:[#allocation2 + $0x141] sm:$0xff]  ;;  %v728_v2 = vld [vmem:[#allocation2 + $0x159] sm:$0xff]  ;;  %v893_v8 = vld [vmem:[#allocation2 + $0xa] sm:$0xff] }
  0x45   : > { %v3654_v50 = vld [vmem:[#allocation2 + $0x168] sm:$0xff]  ;;  %v3656_v53 = vld [vmem:[#allocation2 + $0x170] sm:$0xff]  ;;  %v508_v61 = vmul.f32 %v3345_v4, %v437_v59  ;;  %vm470_vm2 = vcmp.ge.f32.partialorder %v437_v59, 0.0  ;;  %v541_v1 = vsel %vm471_vm3, %v438_v60, %v509_v63  ;;  %v3678_v4 = vld [vmem:[#allocation2 + $0x1a] sm:$0xff] }
  0x46   : > { %793 = vrot.lane.b32.xlu1 %v714_v21, %s3200_s11  ;;  %697 = vst.msk [vmem:[#allocation3 + $0xf0] sm:$0xff] %vm542_vm0, %v3654_v50  ;;  %698 = vst.msk [vmem:[#allocation3 + $0xf8] sm:$0xff] %vm542_vm0, %v3656_v53  ;;  %v729_v0 = vld [vmem:[#allocation2 + $0x169] sm:$0xff]  ;;  %v730_v7 = vld [vmem:[#allocation2 + $0x171] sm:$0xff] }
  0x47   : > { %799 = vrot.lane.b32.xlu0 %v3597_v22, %s3200_s11  ;;  %v540_v3 = vsel %vm470_vm2, %v437_v59, %v508_v61  ;;  %630 = vst.msk [vmem:[#allocation2 + $0x189] sm:$0xff] %vm542_vm0, %v541_v1  ;;  %v892_v6 = vld [vmem:[#allocation2 + $0x2] sm:$0xff]  ;;  %v3683_v10 = vld [vmem:[#allocation2 + $0x32] sm:$0xff]  ;;  %v3690_v13 = vld [vmem:[#allocation2 + $0x4a] sm:$0xff] }
  0x48   : > { %629 = vst.msk [vmem:[#allocation2 + $0x181] sm:$0xff] %vm542_vm0, %v540_v3  ;;  %v3686_v11 = vld [vmem:[#allocation2 + $0x22] sm:$0xff]  ;;  %v3694_v14 = vld [vmem:[#allocation2 + $0x3a] sm:$0xff]  ;;  %v3702_v21 = vld [vmem:[#allocation2 + $0x52] sm:$0xff]  ;;  %vm859_vm0 = vcmask 64544  }
  0x49   : > { %v3698_v15 = vld [vmem:[#allocation2 + $0x62] sm:$0xff]  ;;  %v906_v47 = vld [vmem:[#allocation2 + $0xaa] sm:$0xff]  ;;  %v905_v54 = vld [vmem:[#allocation2 + $0x9a] sm:$0xff] }
  0x4a   : > { %797 = vrot.lane.b32.xlu1 %v716_v23, %s3200_s11  ;;  %v902_v23 = vld [vmem:[#allocation2 + $0x7a] sm:$0xff]  ;;  %v908_v55 = vld [vmem:[#allocation2 + $0xc2] sm:$0xff]  ;;  %v3720_v59 = vld [vmem:[#allocation2 + $0xf2] sm:$0xff] }
  0x4b   : > { %803 = vrot.lane.b32.xlu0 %v3602_v24, %s3200_s11  ;;  %v3715_v57 = vld [vmem:[#allocation2 + $0xda] sm:$0xff]  ;;  %v3723_v60 = vld [vmem:[#allocation2 + $0xe2] sm:$0xff]  ;;  %v3727_v61 = vld [vmem:[#allocation2 + $0x10a] sm:$0xff] }
  0x4c   : > { %v3740_v3 = vld [vmem:[#allocation2 + $0x112] sm:$0xff] }
  0x4e   : > { %801 = vrot.lane.b32.xlu1 %v3613_v29, %s3200_s11 }
  0x4f   : > { %807 = vrot.lane.b32.xlu0 %v3621_v32, %s3200_s11 }
  0x52   : > { %805 = vrot.lane.b32.xlu1 %v3633_v38, %s3200_s11 }
  0x53   : > { %811 = vrot.lane.b32.xlu0 %v723_v39, %s3200_s11  ;;  %v901_v39 = vld [vmem:[#allocation2 + $0x6a] sm:$0xff] }
  0x56   : > { %809 = vrot.lane.b32.xlu1 %v722_v45, %s3200_s11  ;;  %v904_v45 = vld [vmem:[#allocation2 + $0x92] sm:$0xff] }
  0x57   : > { %815 = vrot.lane.b32.xlu0 %v725_v46, %s3200_s11  ;;  %v903_v46 = vld [vmem:[#allocation2 + $0x82] sm:$0xff] }
  0x5a   : > { %813 = vrot.lane.b32.xlu1 %v724_v56, %s3200_s11  ;;  %v907_v56 = vld [vmem:[#allocation2 + $0xb2] sm:$0xff] }
  0x5b   : > { %819 = vrot.lane.b32.xlu0 %v727_v58, %s3200_s11  ;;  %v909_v58 = vld [vmem:[#allocation2 + $0xca] sm:$0xff] }
  0x5e   : > { %817 = vrot.lane.b32.xlu1 %v726_v62, %s3200_s11  ;;  %v3731_v62 = vld [vmem:[#allocation2 + $0xfa] sm:$0xff] }
  0x5f   : > { %823 = vrot.lane.b32.xlu0 %v729_v0, %s3200_s11  ;;  %v3735_v0 = vld [vmem:[#allocation2 + $0x122] sm:$0xff] }
  0x62   : > { %821 = vrot.lane.b32.xlu1 %v728_v2, %s3200_s11  ;;  %v918_v2 = vld [vmem:[#allocation2 + $0x13a] sm:$0xff] }
  0x63   : > { %956 = vrot.lane.b32.xlu0 %v892_v6, %s3201_s12  ;;  %v3747_v6 = vld [vmem:[#allocation2 + $0x12a] sm:$0xff] }
  0x66   : > { %825 = vrot.lane.b32.xlu1 %v730_v7, %s3200_s11  ;;  %v920_v7 = vld [vmem:[#allocation2 + $0x152] sm:$0xff] }
  0x67   : > { %960 = vrot.lane.b32.xlu0 %v3678_v4, %s3201_s12 }
  0x6a   : > { %958 = vrot.lane.b32.xlu1 %v893_v8, %s3201_s12  ;;  %v919_v8 = vld [vmem:[#allocation2 + $0x142] sm:$0xff] }
  0x6b   : > { %964 = vrot.lane.b32.xlu0 %v3683_v10, %s3201_s12 }
  0x6e   : > { %962 = vrot.lane.b32.xlu1 %v3686_v11, %s3201_s12 }
  0x6f   : > { %968 = vrot.lane.b32.xlu0 %v3690_v13, %s3201_s12 }
  0x72   : > { %966 = vrot.lane.b32.xlu1 %v3694_v14, %s3201_s12 }
  0x73   : > { %972 = vrot.lane.b32.xlu0 %v3698_v15, %s3201_s12 }
  0x76   : > { %970 = vrot.lane.b32.xlu1 %v3702_v21, %s3201_s12 }
  0x77   : > { %976 = vrot.lane.b32.xlu0 %v902_v23, %s3201_s12 }
  0x7a   : > { %974 = vrot.lane.b32.xlu1 %v901_v39, %s3201_s12  ;;  %v922_v39 = vld [vmem:[#allocation2 + $0x16a] sm:$0xff] }
  0x7b   : > { %980 = vrot.lane.b32.xlu0 %v904_v45, %s3201_s12 }
  0x7e   : > { %978 = vrot.lane.b32.xlu1 %v903_v46, %s3201_s12  ;;  %v921_v46 = vld [vmem:[#allocation2 + $0x15a] sm:$0xff] }
  0x7f   : > { %984 = vrot.lane.b32.xlu0 %v906_v47, %s3201_s12 }
  0x81   : > { %v764_v63 = vpop.permute.xlu0 %763 }
  0x82   : > { %982 = vrot.lane.b32.xlu1 %v905_v54, %s3201_s12  ;;  %860 = vst.msk [vmem:[#allocation3] sm:$0xff] %vm859_vm0, %v764_v63 }
  0x83   : > { %988 = vrot.lane.b32.xlu0 %v908_v55, %s3201_s12  ;;  %v923_v55 = vld [vmem:[#allocation2 + $0x172] sm:$0xff] }
  0x86   : > { %986 = vrot.lane.b32.xlu1 %v907_v56, %s3201_s12 }
  0x87   : > { %992 = vrot.lane.b32.xlu0 %v3715_v57, %s3201_s12 }
  0x8a   : > { %990 = vrot.lane.b32.xlu1 %v909_v58, %s3201_s12 }
  0x8b   : > { %996 = vrot.lane.b32.xlu0 %v3720_v59, %s3201_s12 }
  0x8e   : > { %994 = vrot.lane.b32.xlu1 %v3723_v60, %s3201_s12 }
  0x8f   : > { %1000 = vrot.lane.b32.xlu0 %v3727_v61, %s3201_s12 }
  0x92   : > { %998 = vrot.lane.b32.xlu1 %v3731_v62, %s3201_s12 }
  0x93   : > { %1004 = vrot.lane.b32.xlu0 %v3735_v0, %s3201_s12  ;;  %v766_v1 = vpop.permute.xlu0 %765 }
  0x94   : > { %861 = vst.msk [vmem:[#allocation3 + $0x8] sm:$0xff] %vm859_vm0, %v766_v1 }
  0x96   : > { %1002 = vrot.lane.b32.xlu1 %v3740_v3, %s3201_s12 }
  0x97   : > { %1008 = vrot.lane.b32.xlu0 %v918_v2, %s3201_s12 }
  0x9a   : > { %1006 = vrot.lane.b32.xlu1 %v3747_v6, %s3201_s12 }
  0x9b   : > { %1012 = vrot.lane.b32.xlu0 %v920_v7, %s3201_s12 }
  0x9c   : > { %v768_v23 = vpop.permute.xlu1 %767 }
  0x9d   : > { %862 = vst.msk [vmem:[#allocation3 + $0x10] sm:$0xff] %vm859_vm0, %v768_v23  ;;  %v772_v45 = vpop.permute.xlu0 %771 }
  0x9e   : > { %1010 = vrot.lane.b32.xlu1 %v919_v8, %s3201_s12  ;;  %864 = vst.msk [vmem:[#allocation3 + $0x20] sm:$0xff] %vm859_vm0, %v772_v45 }
  0x9f   : > { %1016 = vrot.lane.b32.xlu0 %v922_v39, %s3201_s12 }
  0xa0   : > { %v770_v47 = vpop.permute.xlu1 %769 }
  0xa1   : > { %863 = vst.msk [vmem:[#allocation3 + $0x18] sm:$0xff] %vm859_vm0, %v770_v47  ;;  %v776_v54 = vpop.permute.xlu0 %775 }
  0xa2   : > { %1014 = vrot.lane.b32.xlu1 %v921_v46, %s3201_s12  ;;  %866 = vst.msk [vmem:[#allocation3 + $0x30] sm:$0xff] %vm859_vm0, %v776_v54 }
  0xa3   : > { %1152 = vrot.lane.b32.xlu0 %v3435_v33, %s3202_s13 }
  0xa4   : > { %v774_v56 = vpop.permute.xlu1 %773 }
  0xa5   : > { %865 = vst.msk [vmem:[#allocation3 + $0x28] sm:$0xff] %vm859_vm0, %v774_v56  ;;  %v780_v58 = vpop.permute.xlu0 %779 }
  0xa6   : > { %1018 = vrot.lane.b32.xlu1 %v923_v55, %s3201_s12  ;;  %868 = vst.msk [vmem:[#allocation3 + $0x40] sm:$0xff] %vm859_vm0, %v780_v58 }
  0xa7   : > { %1156 = vrot.lane.b32.xlu0 %v3439_v35, %s3202_s13 }
  0xa8   : > { %v778_v63 = vpop.permute.xlu1 %777 }
  0xa9   : > { %867 = vst.msk [vmem:[#allocation3 + $0x38] sm:$0xff] %vm859_vm0, %v778_v63  ;;  %v784_v1 = vpop.permute.xlu0 %783 }
  0xaa   : > { %1154 = vrot.lane.b32.xlu1 %v3437_v34, %s3202_s13  ;;  %870 = vst.msk [vmem:[#allocation3 + $0x50] sm:$0xff] %vm859_vm0, %v784_v1 }
  0xab   : > { %1160 = vrot.lane.b32.xlu0 %v3452_v41, %s3202_s13 }
  0xac   : > { %v782_v33 = vpop.permute.xlu1 %781 }
  0xad   : > { %869 = vst.msk [vmem:[#allocation3 + $0x48] sm:$0xff] %vm859_vm0, %v782_v33  ;;  %v788_v2 = vpop.permute.xlu0 %787 }
  0xae   : > { %1158 = vrot.lane.b32.xlu1 %v3450_v40, %s3202_s13  ;;  %872 = vst.msk [vmem:[#allocation3 + $0x60] sm:$0xff] %vm859_vm0, %v788_v2  ;;  %v2833_v2 = vld [vmem:[#allocation2 + $0x180] sm:$0xff] }
  0xaf   : > { %1164 = vrot.lane.b32.xlu0 %v3471_v51, %s3202_s13 }
  0xb0   : > { %v786_v7 = vpop.permute.xlu1 %785 }
  0xb1   : > { %871 = vst.msk [vmem:[#allocation3 + $0x58] sm:$0xff] %vm859_vm0, %v786_v7  ;;  %v792_v34 = vpop.permute.xlu0 %791 }
  0xb2   : > { %1162 = vrot.lane.b32.xlu1 %v3454_v42, %s3202_s13  ;;  %874 = vst.msk [vmem:[#allocation3 + $0x70] sm:$0xff] %vm859_vm0, %v792_v34 }
  0xb3   : > { %1168 = vrot.lane.b32.xlu0 %v3498_v12, %s3202_s13 }
  0xb4   : > { %v790_v8 = vpop.permute.xlu1 %789 }
  0xb5   : > { %873 = vst.msk [vmem:[#allocation3 + $0x68] sm:$0xff] %vm859_vm0, %v790_v8  ;;  %v796_v23 = vpop.permute.xlu0 %795  ;;  %v2835_v8 = vld [vmem:[#allocation2 + $0x19] sm:$0xff] }
  0xb6   : > { %1166 = vrot.lane.b32.xlu1 %v3473_v52, %s3202_s13  ;;  %876 = vst.msk [vmem:[#allocation3 + $0x80] sm:$0xff] %vm859_vm0, %v796_v23 }
  0xb7   : > { %1172 = vrot.lane.b32.xlu0 %v3508_v18, %s3202_s13 }
  0xb8   : > { %v794_v39 = vpop.permute.xlu1 %793 }
  0xb9   : > { %875 = vst.msk [vmem:[#allocation3 + $0x78] sm:$0xff] %vm859_vm0, %v794_v39  ;;  %v800_v45 = vpop.permute.xlu0 %799 }
  0xba   : > { %1170 = vrot.lane.b32.xlu1 %v3506_v17, %s3202_s13  ;;  %878 = vst.msk [vmem:[#allocation3 + $0x90] sm:$0xff] %vm859_vm0, %v800_v45  ;;  %v2837_v45 = vld [vmem:[#allocation2 + $0x31] sm:$0xff] }
  0xbb   : > { %1176 = vrot.lane.b32.xlu0 %v3528_v27, %s3202_s13 }
  0xbc   : > { %v798_v46 = vpop.permute.xlu1 %797 }
  0xbd   : > { %877 = vst.msk [vmem:[#allocation3 + $0x88] sm:$0xff] %vm859_vm0, %v798_v46  ;;  %v804_v47 = vpop.permute.xlu0 %803 }
  0xbe   : > { %1174 = vrot.lane.b32.xlu1 %v3510_v19, %s3202_s13  ;;  %880 = vst.msk [vmem:[#allocation3 + $0xa0] sm:$0xff] %vm859_vm0, %v804_v47  ;;  %v2836_v47 = vld [vmem:[#allocation2 + $0x21] sm:$0xff] }
  0xbf   : > { %1180 = vrot.lane.b32.xlu0 %v3550_v48, %s3202_s13 }
  0xc0   : > { %v802_v18 = vpop.permute.xlu1 %801 }
  0xc1   : > { %879 = vst.msk [vmem:[#allocation3 + $0x98] sm:$0xff] %vm859_vm0, %v802_v18  ;;  %v808_v54 = vpop.permute.xlu0 %807 }
  0xc2   : > { %1178 = vrot.lane.b32.xlu1 %v3530_v28, %s3202_s13  ;;  %882 = vst.msk [vmem:[#allocation3 + $0xb0] sm:$0xff] %vm859_vm0, %v808_v54 }
  0xc3   : > { %1184 = vrot.lane.b32.xlu0 %v3570_v5, %s3202_s13 }
  0xc4   : > { %v806_v27 = vpop.permute.xlu1 %805 }
  0xc5   : > { %881 = vst.msk [vmem:[#allocation3 + $0xa8] sm:$0xff] %vm859_vm0, %v806_v27  ;;  %v812_v19 = vpop.permute.xlu0 %811 }
  0xc6   : > { %1182 = vrot.lane.b32.xlu1 %v3552_v49, %s3202_s13  ;;  %884 = vst.msk [vmem:[#allocation3 + $0xc0] sm:$0xff] %vm859_vm0, %v812_v19 }
  0xc7   : > { %1188 = vrot.lane.b32.xlu0 %v3586_v16, %s3202_s13 }
  0xc8   : > { %v810_v48 = vpop.permute.xlu1 %809 }
  0xc9   : > { %883 = vst.msk [vmem:[#allocation3 + $0xb8] sm:$0xff] %vm859_vm0, %v810_v48  ;;  %v816_v28 = vpop.permute.xlu0 %815 }
  0xca   : > { %1186 = vrot.lane.b32.xlu1 %v3577_v9, %s3202_s13  ;;  %886 = vst.msk [vmem:[#allocation3 + $0xd0] sm:$0xff] %vm859_vm0, %v816_v28 }
  0xcb   : > { %1192 = vrot.lane.b32.xlu0 %v3604_v25, %s3202_s13 }
  0xcc   : > { %v814_v5 = vpop.permute.xlu1 %813 }
  0xcd   : > { %885 = vst.msk [vmem:[#allocation3 + $0xc8] sm:$0xff] %vm859_vm0, %v814_v5  ;;  %v820_v49 = vpop.permute.xlu0 %819  ;;  %v2281_v5 = vld [vmem:[%s4450_s4] sm:$0xff] }
  0xce   : > { %1190 = vrot.lane.b32.xlu1 %v3588_v20, %s3202_s13  ;;  %888 = vst.msk [vmem:[#allocation3 + $0xe0] sm:$0xff] %vm859_vm0, %v820_v49  ;;  %v2282_v49 = vld [vmem:[%s4450_s4 + $0x8] sm:$0xff] }
  0xcf   : > { %1196 = vrot.lane.b32.xlu0 %v3617_v30, %s3202_s13 }
  0xd0   : > { %v818_v55 = vpop.permute.xlu1 %817 }
  0xd1   : > { %887 = vst.msk [vmem:[#allocation3 + $0xd8] sm:$0xff] %vm859_vm0, %v818_v55  ;;  %v824_v9 = vpop.permute.xlu0 %823 }
  0xd2   : > { %1194 = vrot.lane.b32.xlu1 %v3608_v26, %s3202_s13  ;;  %890 = vst.msk [vmem:[#allocation3 + $0xf0] sm:$0xff] %vm859_vm0, %v824_v9  ;;  %v3128_v9 = vpack.c.bf16 %v2282_v49, %v2281_v5 }
  0xd3   : > { %1200 = vrot.lane.b32.xlu0 %v3629_v36, %s3202_s13 }
  0xd4   : > { %v822_v56 = vpop.permute.xlu1 %821  ;;  %3129 = vmatprep.subr.bf16.mxu0 %v3128_v9  ;;  %3136 = vmatprep.subr.bf16.mxu1 %v3128_v9 }
  0xd5   : > { %889 = vst.msk [vmem:[#allocation3 + $0xe8] sm:$0xff] %vm859_vm0, %v822_v56  ;;  %v957_v58 = vpop.permute.xlu0 %956  ;;  %3131 = vmatpush3.bf16.msra.mxu0 %v3128_v9  ;;  %3139 = vmatpush3.bf16.msra.mxu1 %v3128_v9  ;;  %v2873_v9 = vld [vmem:[#allocation2 + $0x62] sm:$0xff] }
  0xd6   : > { %1198 = vrot.lane.b32.xlu1 %v3619_v31, %s3202_s13  ;;  %1053 = vst.msk [vmem:[#allocation3] sm:$0xff] %vm1052_vm4, %v957_v58  ;;  %v2284_v58 = vld [vmem:[%s4450_s4 + $0x18] sm:$0xff] }
  0xd7   : > { %1204 = vrot.lane.b32.xlu0 %v3643_v43, %s3202_s13 }
  0xd8   : > { %v826_v63 = vpop.permute.xlu1 %825 }
  0xd9   : > { %891 = vst.msk [vmem:[#allocation3 + $0xf8] sm:$0xff] %vm859_vm0, %v826_v63  ;;  %v961_v1 = vpop.permute.xlu0 %960 }
  0xda   : > { %1202 = vrot.lane.b32.xlu1 %v3631_v37, %s3202_s13  ;;  %1055 = vst.msk [vmem:[#allocation3 + $0x10] sm:$0xff] %vm1052_vm4, %v961_v1 }
  0xdb   : > { %1208 = vrot.lane.b32.xlu0 %v3654_v50, %s3202_s13  ;;  %v2834_v50 = vld [vmem:[#allocation2 + $0x188] sm:$0xff] }
  0xdc   : > { %v959_v33 = vpop.permute.xlu1 %958 }
  0xdd   : > { %1054 = vst.msk [vmem:[#allocation3 + $0x8] sm:$0xff] %vm1052_vm4, %v959_v33  ;;  %v965_v7 = vpop.permute.xlu0 %964 }
  0xde   : > { %1206 = vrot.lane.b32.xlu1 %v3645_v44, %s3202_s13  ;;  %1057 = vst.msk [vmem:[#allocation3 + $0x20] sm:$0xff] %vm1052_vm4, %v965_v7 }
  0xdf   : > { %1212 = vrot.lane.b32.xlu0 %v2833_v2, %s3202_s13 }
  0xe0   : > { %v963_v34 = vpop.permute.xlu1 %962 }
  0xe1   : > { %1056 = vst.msk [vmem:[#allocation3 + $0x18] sm:$0xff] %vm1052_vm4, %v963_v34  ;;  %v969_v23 = vpop.permute.xlu0 %968  ;;  %v2285_v34 = vld [vmem:[%s4450_s4 + $0x20] sm:$0xf] }
  0xe2   : > { %1210 = vrot.lane.b32.xlu1 %v3656_v53, %s3202_s13  ;;  %1059 = vst.msk [vmem:[#allocation3 + $0x30] sm:$0xff] %vm1052_vm4, %v969_v23 }
  0xe3   : > { %1345 = vrot.lane.b32.xlu0 %v2835_v8, %s3203_s14 }
  0xe4   : > { %v967_v39 = vpop.permute.xlu1 %966 }
  0xe5   : > { %1058 = vst.msk [vmem:[#allocation3 + $0x28] sm:$0xff] %vm1052_vm4, %v967_v39  ;;  %v973_v46 = vpop.permute.xlu0 %972  ;;  %v2933_v39 = vld [vmem:[#allocation2 + $0x49] sm:$0xff] }
  0xe6   : > { %1214 = vrot.lane.b32.xlu1 %v2834_v50, %s3202_s13  ;;  %1061 = vst.msk [vmem:[#allocation3 + $0x40] sm:$0xff] %vm1052_vm4, %v973_v46  ;;  %v2934_v46 = vld [vmem:[#allocation2 + $0x51] sm:$0xff] }
  0xe7   : > { %1349 = vrot.lane.b32.xlu0 %v2837_v45, %s3203_s14 }
  0xe8   : > { %v971_v18 = vpop.permute.xlu1 %970 }
  0xe9   : > { %1060 = vst.msk [vmem:[#allocation3 + $0x38] sm:$0xff] %vm1052_vm4, %v971_v18  ;;  %v977_v53 = vpop.permute.xlu0 %976 }
  0xea   : > { %1347 = vrot.lane.b32.xlu1 %v2836_v47, %s3203_s14  ;;  %1063 = vst.msk [vmem:[#allocation3 + $0x50] sm:$0xff] %vm1052_vm4, %v977_v53  ;;  %v2855_v47 = vld [vmem:[#allocation2 + $0x109] sm:$0xff]  ;;  %v2950_v53 = vld [vmem:[#allocation2 + $0x111] sm:$0xff] }
  0xeb   : > { %1379 = vrot.lane.b32.xlu0 %v3613_v29, %s3203_s14 }
  0xec   : > { %v975_v54 = vpop.permute.xlu1 %974 }
  0xed   : > { %1062 = vst.msk [vmem:[#allocation3 + $0x48] sm:$0xff] %vm1052_vm4, %v975_v54  ;;  %v981_v27 = vpop.permute.xlu0 %980 }
  0xee   : > { %1377 = vrot.lane.b32.xlu1 %v3597_v22, %s3203_s14  ;;  %1065 = vst.msk [vmem:[#allocation3 + $0x60] sm:$0xff] %vm1052_vm4, %v981_v27 }
  0xef   : > { %1570 = vrot.lane.b32.xlu0 %v3715_v57, %s3204_s15 }
  0xf0   : > { %v979_v19 = vpop.permute.xlu1 %978 }
  0xf1   : > { %1064 = vst.msk [vmem:[#allocation3 + $0x58] sm:$0xff] %vm1052_vm4, %v979_v19  ;;  %v985_v48 = vpop.permute.xlu0 %984 }
  0xf2   : > { %1538 = vrot.lane.b32.xlu1 %v3678_v4, %s3204_s15  ;;  %1067 = vst.msk [vmem:[#allocation3 + $0x70] sm:$0xff] %vm1052_vm4, %v985_v48 }
  0xf3   : > { %1572 = vrot.lane.b32.xlu0 %v3723_v60, %s3204_s15 }
  0xf4   : > { %v983_v29 = vpop.permute.xlu1 %982 }
  0xf5   : > { %1066 = vst.msk [vmem:[#allocation3 + $0x68] sm:$0xff] %vm1052_vm4, %v983_v29  ;;  %v989_v22 = vpop.permute.xlu0 %988 }
  0xf6   : > { %1540 = vrot.lane.b32.xlu1 %v3686_v11, %s3204_s15  ;;  %1069 = vst.msk [vmem:[#allocation3 + $0x80] sm:$0xff] %vm1052_vm4, %v989_v22 }
  0xf7   : > { %1766 = vrot.lane.b32.xlu0 %v3586_v16, %s3205_s16 }
  0xf8   : > { %v987_v57 = vpop.permute.xlu1 %986 }
  0xf9   : > { %1068 = vst.msk [vmem:[#allocation3 + $0x78] sm:$0xff] %vm1052_vm4, %v987_v57  ;;  %v993_v4 = vpop.permute.xlu0 %992 }
  0xfa   : > { %1734 = vrot.lane.b32.xlu1 %v3439_v35, %s3205_s16  ;;  %1071 = vst.msk [vmem:[#allocation3 + $0x90] sm:$0xff] %vm1052_vm4, %v993_v4  ;;  %v2932_v35 = vld [vmem:[#allocation2 + $0x39] sm:$0xff] }
  0xfb   : > { %1768 = vrot.lane.b32.xlu0 %v3588_v20, %s3205_s16 }
  0xfc   : > { %v991_v60 = vpop.permute.xlu1 %990 }
  0xfd   : > { %1070 = vst.msk [vmem:[#allocation3 + $0x88] sm:$0xff] %vm1052_vm4, %v991_v60  ;;  %v997_v11 = vpop.permute.xlu0 %996 }
  0xfe   : > { %1736 = vrot.lane.b32.xlu1 %v3450_v40, %s3205_s16  ;;  %1073 = vst.msk [vmem:[#allocation3 + $0xa0] sm:$0xff] %vm1052_vm4, %v997_v11  ;;  %v2935_v11 = vld [vmem:[#allocation2 + $0x61] sm:$0xff] }
  0xff   : > { %1959 = vrot.lane.b32.xlu0 %v3602_v24, %s3206_s17 }
 0x100   : > { %v995_v16 = vpop.permute.xlu1 %994 }
 0x101   : > { %1072 = vst.msk [vmem:[#allocation3 + $0x98] sm:$0xff] %vm1052_vm4, %v995_v16  ;;  %v1001_v28 = vpop.permute.xlu0 %1000 }
 0x102   : > { %1927 = vrot.lane.b32.xlu1 %v2837_v45, %s3206_s17  ;;  %1075 = vst.msk [vmem:[#allocation3 + $0xb0] sm:$0xff] %vm1052_vm4, %v1001_v28  ;;  %v2936_v28 = vld [vmem:[#allocation2 + $0x69] sm:$0xff] }
 0x103   : > { %1929 = vrot.lane.b32.xlu0 %v2932_v35, %s3206_s17 }
 0x104   : > { %v999_v20 = vpop.permute.xlu1 %998 }
 0x105   : > { %1074 = vst.msk [vmem:[#allocation3 + $0xa8] sm:$0xff] %vm1052_vm4, %v999_v20  ;;  %v1005_v40 = vpop.permute.xlu0 %1004 }
 0x106   : > { %1381 = vrot.lane.b32.xlu1 %v3602_v24, %s3203_s14  ;;  %1077 = vst.msk [vmem:[#allocation3 + $0xc0] sm:$0xff] %vm1052_vm4, %v1005_v40  ;;  %v2283_v24 = vld [vmem:[%s4450_s4 + $0x10] sm:$0xff] }
 0x107   : > { %2120 = vrot.lane.b32.xlu0 %v3683_v10, %s3207_s18  ;;  %v3132_v1 = vpack.c.bf16 %v2284_v58, %v2283_v24  ;;  %v2952_v40 = vld [vmem:[#allocation2 + $0x129] sm:$0xff] }
 0x108   : > { %v1003_v55 = vpop.permute.xlu1 %1002  ;;  %v2968_v24 = vld [vmem:[#allocation2 + $0x6a] sm:$0xff] }
 0x109   : > { %1076 = vst.msk [vmem:[#allocation3 + $0xb8] sm:$0xff] %vm1052_vm4, %v1003_v55  ;;  %v1009_v56 = vpop.permute.xlu0 %1008  ;;  %3133 = vmatprep.subr.bf16.mxu0 %v3132_v1  ;;  %3137 = vmatprep.subr.bf16.mxu1 %v3132_v1 }
 0x10a   : > { %1961 = vrot.lane.b32.xlu1 %v3633_v38, %s3206_s17  ;;  %1079 = vst.msk [vmem:[#allocation3 + $0xd0] sm:$0xff] %vm1052_vm4, %v1009_v56  ;;  %3135 = vmatpush3.bf16.msra.mxu0 %v3132_v1 }
 0x10b   : > { %1351 = vrot.lane.b32.xlu0 %v2932_v35, %s3203_s14  ;;  %3140 = vmatpush3.bf16.msra.mxu1 %v3132_v1 }
 0x10c   : > { %v1007_v63 = vpop.permute.xlu1 %1006  ;;  %3078 = vmatprep.subr.msk.mxu0 %vm2390_vm5, %v2285_v34  ;;  %3138 = vmatprep.subr.msk.mxu1 %vm2390_vm5, %v2285_v34 }
 0x10d   : > { %1078 = vst.msk [vmem:[#allocation3 + $0xc8] sm:$0xff] %vm1052_vm4, %v1007_v63  ;;  %v1013_v33 = vpop.permute.xlu0 %1012 }
 0x10e   : > { %2152 = vrot.lane.b32.xlu1 %v3720_v59, %s3207_s18  ;;  %1081 = vst.msk [vmem:[#allocation3 + $0xe0] sm:$0xff] %vm1052_vm4, %v1013_v33  ;;  %3079 = vmatpush3.msk.msra.mxu0 %vm2390_vm5, %v2285_v34 }
 0x10f   : > { %1542 = vrot.lane.b32.xlu0 %v3683_v10, %s3204_s15  ;;  %3141 = vmatpush3.msk.msra.mxu1 %vm2390_vm5, %v2285_v34 }
 0x110   : > { %v1011_v2 = vpop.permute.xlu1 %1010 }
 0x111   : > { %1080 = vst.msk [vmem:[#allocation3 + $0xd8] sm:$0xff] %vm1052_vm4, %v1011_v2  ;;  %v1017_v7 = vpop.permute.xlu0 %1016 }
 0x112   : > { %1383 = vrot.lane.b32.xlu1 %v3633_v38, %s3203_s14  ;;  %1083 = vst.msk [vmem:[#allocation3 + $0xf0] sm:$0xff] %vm1052_vm4, %v1017_v7  ;;  %v2890_v7 = vld [vmem:[#allocation2 + $0x12a] sm:$0xff] }
 0x113   : > { %2122 = vrot.lane.b32.xlu0 %v3694_v14, %s3207_s18 }
 0x114   : > { %v1015_v10 = vpop.permute.xlu1 %1014 }
 0x115   : > { %1082 = vst.msk [vmem:[#allocation3 + $0xe8] sm:$0xff] %vm1052_vm4, %v1015_v10  ;;  %v1153_v8 = vpop.permute.xlu0 %1152 }
 0x116   : > { %1574 = vrot.lane.b32.xlu1 %v3720_v59, %s3204_s15  ;;  %1249 = vst.msk [vmem:[#allocation3] sm:$0xff] %vm1248_vm6, %v1153_v8  ;;  %v2937_v8 = vld [vmem:[#allocation2 + $0x79] sm:$0xff] }
 0x117   : > { %1544 = vrot.lane.b32.xlu0 %v3694_v14, %s3204_s15 }
 0x118   : > { %v1019_v38 = vpop.permute.xlu1 %1018 }
 0x119   : > { %1084 = vst.msk [vmem:[#allocation3 + $0xf8] sm:$0xff] %vm1052_vm4, %v1019_v38  ;;  %v1157_v23 = vpop.permute.xlu0 %1156 }
 0x11a   : > { %2154 = vrot.lane.b32.xlu1 %v3731_v62, %s3207_s18  ;;  %1251 = vst.msk [vmem:[#allocation3 + $0x10] sm:$0xff] %vm1248_vm6, %v1157_v23 }
 0x11b   : > { %1738 = vrot.lane.b32.xlu0 %v3452_v41, %s3205_s16 }
 0x11c   : > { %v1155_v50 = vpop.permute.xlu1 %1154 }
 0x11d   : > { %1250 = vst.msk [vmem:[#allocation3 + $0x8] sm:$0xff] %vm1248_vm6, %v1155_v50  ;;  %v1161_v59 = vpop.permute.xlu0 %1160  ;;  %v2938_v50 = vld [vmem:[#allocation2 + $0x81] sm:$0xff] }
 0x11e   : > { %1576 = vrot.lane.b32.xlu1 %v3731_v62, %s3204_s15  ;;  %1253 = vst.msk [vmem:[#allocation3 + $0x20] sm:$0xff] %vm1248_vm6, %v1161_v59 }
 0x11f   : > { %1740 = vrot.lane.b32.xlu0 %v3454_v42, %s3205_s16 }
 0x120   : > { %v1159_v14 = vpop.permute.xlu1 %1158 }
 0x121   : > { %1252 = vst.msk [vmem:[#allocation3 + $0x18] sm:$0xff] %vm1248_vm6, %v1159_v14  ;;  %v1165_v45 = vpop.permute.xlu0 %1164  ;;  %v2969_v14 = vld [vmem:[#allocation2 + $0x7a] sm:$0xff] }
 0x122   : > { %1770 = vrot.lane.b32.xlu1 %v3604_v25, %s3205_s16  ;;  %1255 = vst.msk [vmem:[#allocation3 + $0x30] sm:$0xff] %vm1248_vm6, %v1165_v45 }
 0x123   : > { %1931 = vrot.lane.b32.xlu0 %v2933_v39, %s3206_s17 }
 0x124   : > { %v1163_v41 = vpop.permute.xlu1 %1162 }
 0x125   : > { %1254 = vst.msk [vmem:[#allocation3 + $0x28] sm:$0xff] %vm1248_vm6, %v1163_v41  ;;  %v1169_v62 = vpop.permute.xlu0 %1168 }
 0x126   : > { %1772 = vrot.lane.b32.xlu1 %v3608_v26, %s3205_s16  ;;  %1257 = vst.msk [vmem:[#allocation3 + $0x40] sm:$0xff] %vm1248_vm6, %v1169_v62 }
 0x127   : > { %1353 = vrot.lane.b32.xlu0 %v2933_v39, %s3203_s14  ;;  %v2954_v39 = vld [vmem:[#allocation2 + $0x141] sm:$0xff] }
 0x128   : > { %v1167_v42 = vpop.permute.xlu1 %1166 }
 0x129   : > { %1256 = vst.msk [vmem:[#allocation3 + $0x38] sm:$0xff] %vm1248_vm6, %v1167_v42  ;;  %v1173_v25 = vpop.permute.xlu0 %1172  ;;  %v2985_v42 = vld [vmem:[#allocation2 + $0x13a] sm:$0xff] }
 0x12a   : > { %1963 = vrot.lane.b32.xlu1 %v3621_v32, %s3206_s17  ;;  %1259 = vst.msk [vmem:[#allocation3 + $0x50] sm:$0xff] %vm1248_vm6, %v1173_v25 }
 0x12b   : > { %1933 = vrot.lane.b32.xlu0 %v2934_v46, %s3206_s17 }
 0x12c   : > { %v1171_v18 = vpop.permute.xlu1 %1170 }
 0x12d   : > { %1258 = vst.msk [vmem:[#allocation3 + $0x48] sm:$0xff] %vm1248_vm6, %v1171_v18  ;;  %v1177_v26 = vpop.permute.xlu0 %1176 }
 0x12e   : > { %1385 = vrot.lane.b32.xlu1 %v2855_v47, %s3203_s14  ;;  %1261 = vst.msk [vmem:[#allocation3 + $0x60] sm:$0xff] %vm1248_vm6, %v1177_v26  ;;  %v2970_v26 = vld [vmem:[#allocation2 + $0x82] sm:$0xff] }
 0x12f   : > { %2124 = vrot.lane.b32.xlu0 %v3690_v13, %s3207_s18 }
 0x130   : > { %v1175_v54 = vpop.permute.xlu1 %1174 }
 0x131   : > { %1260 = vst.msk [vmem:[#allocation3 + $0x58] sm:$0xff] %vm1248_vm6, %v1175_v54  ;;  %v1181_v32 = vpop.permute.xlu0 %1180 }
 0x132   : > { %1965 = vrot.lane.b32.xlu1 %v2950_v53, %s3206_s17  ;;  %1263 = vst.msk [vmem:[#allocation3 + $0x70] sm:$0xff] %vm1248_vm6, %v1181_v32 }
 0x133   : > { %1355 = vrot.lane.b32.xlu0 %v2934_v46, %s3203_s14 }
 0x134   : > { %v1179_v27 = vpop.permute.xlu1 %1178 }
 0x135   : > { %1262 = vst.msk [vmem:[#allocation3 + $0x68] sm:$0xff] %vm1248_vm6, %v1179_v27  ;;  %v1185_v19 = vpop.permute.xlu0 %1184 }
 0x136   : > { %2156 = vrot.lane.b32.xlu1 %v3727_v61, %s3207_s18  ;;  %1265 = vst.msk [vmem:[#allocation3 + $0x80] sm:$0xff] %vm1248_vm6, %v1185_v19  ;;  %v2986_v19 = vld [vmem:[#allocation2 + $0x142] sm:$0xff] }
 0x137   : > { %1546 = vrot.lane.b32.xlu0 %v3690_v13, %s3204_s15 }
 0x138   : > { %v1183_v48 = vpop.permute.xlu1 %1182 }
 0x139   : > { %1264 = vst.msk [vmem:[#allocation3 + $0x78] sm:$0xff] %vm1248_vm6, %v1183_v48  ;;  %v1189_v29 = vpop.permute.xlu0 %1188 }
 0x13a   : > { %1387 = vrot.lane.b32.xlu1 %v2950_v53, %s3203_s14  ;;  %1267 = vst.msk [vmem:[#allocation3 + $0x90] sm:$0xff] %vm1248_vm6, %v1189_v29  ;;  %v2907_v29 = vld [vmem:[#allocation2 + $0x90] sm:$0xff] }
 0x13b   : > { %2126 = vrot.lane.b32.xlu0 %v3702_v21, %s3207_s18 }
 0x13c   : > { %v1187_v22 = vpop.permute.xlu1 %1186 }
 0x13d   : > { %1266 = vst.msk [vmem:[#allocation3 + $0x88] sm:$0xff] %vm1248_vm6, %v1187_v22  ;;  %v1193_v57 = vpop.permute.xlu0 %1192 }
 0x13e   : > { %1578 = vrot.lane.b32.xlu1 %v3727_v61, %s3204_s15  ;;  %1269 = vst.msk [vmem:[#allocation3 + $0xa0] sm:$0xff] %vm1248_vm6, %v1193_v57 }
 0x13f   : > { %1548 = vrot.lane.b32.xlu0 %v3702_v21, %s3204_s15 }
 0x140   : > { %v1191_v13 = vpop.permute.xlu1 %1190 }
 0x141   : > { %1268 = vst.msk [vmem:[#allocation3 + $0x98] sm:$0xff] %vm1248_vm6, %v1191_v13  ;;  %v1197_v4 = vpop.permute.xlu0 %1196 }
 0x142   : > { %2158 = vrot.lane.b32.xlu1 %v3740_v3, %s3207_s18  ;;  %1271 = vst.msk [vmem:[#allocation3 + $0xb0] sm:$0xff] %vm1248_vm6, %v1197_v4  ;;  %v2908_v4 = vld [vmem:[#allocation2 + $0x98] sm:$0xff] }
 0x143   : > { %1742 = vrot.lane.b32.xlu0 %v3471_v51, %s3205_s16 }
 0x144   : > { %v1195_v60 = vpop.permute.xlu1 %1194 }
 0x145   : > { %1270 = vst.msk [vmem:[#allocation3 + $0xa8] sm:$0xff] %vm1248_vm6, %v1195_v60  ;;  %v1201_v61 = vpop.permute.xlu0 %1200 }
 0x146   : > { %1580 = vrot.lane.b32.xlu1 %v3740_v3, %s3204_s15  ;;  %1273 = vst.msk [vmem:[#allocation3 + $0xc0] sm:$0xff] %vm1248_vm6, %v1201_v61 }
 0x147   : > { %1744 = vrot.lane.b32.xlu0 %v3473_v52, %s3205_s16  ;;  %v2951_v52 = vld [vmem:[#allocation2 + $0x121] sm:$0xff] }
 0x148   : > { %v1199_v21 = vpop.permute.xlu1 %1198 }
 0x149   : > { %1272 = vst.msk [vmem:[#allocation3 + $0xb8] sm:$0xff] %vm1248_vm6, %v1199_v21  ;;  %v1205_v16 = vpop.permute.xlu0 %1204  ;;  %v2939_v21 = vld [vmem:[#allocation2 + $0x91] sm:$0xff] }
 0x14a   : > { %1774 = vrot.lane.b32.xlu1 %v3617_v30, %s3205_s16  ;;  %1275 = vst.msk [vmem:[#allocation3 + $0xd0] sm:$0xff] %vm1248_vm6, %v1205_v16 }
 0x14b   : > { %1935 = vrot.lane.b32.xlu0 %v2935_v11, %s3206_s17 }
 0x14c   : > { %v1203_v51 = vpop.permute.xlu1 %1202 }
 0x14d   : > { %1274 = vst.msk [vmem:[#allocation3 + $0xc8] sm:$0xff] %vm1248_vm6, %v1203_v51  ;;  %v1209_v3 = vpop.permute.xlu0 %1208 }
 0x14e   : > { %1776 = vrot.lane.b32.xlu1 %v3619_v31, %s3205_s16  ;;  %1277 = vst.msk [vmem:[#allocation3 + $0xe0] sm:$0xff] %vm1248_vm6, %v1209_v3  ;;  %v2955_v3 = vld [vmem:[#allocation2 + $0x151] sm:$0xff] }
 0x14f   : > { %1357 = vrot.lane.b32.xlu0 %v2935_v11, %s3203_s14 }
 0x150   : > { %v1207_v35 = vpop.permute.xlu1 %1206 }
 0x151   : > { %1276 = vst.msk [vmem:[#allocation3 + $0xd8] sm:$0xff] %vm1248_vm6, %v1207_v35  ;;  %v1213_v30 = vpop.permute.xlu0 %1212  ;;  %v2940_v35 = vld [vmem:[#allocation2 + $0x99] sm:$0xff] }
 0x152   : > { %1967 = vrot.lane.b32.xlu1 %v2951_v52, %s3206_s17  ;;  %1279 = vst.msk [vmem:[#allocation3 + $0xf0] sm:$0xff] %vm1248_vm6, %v1213_v30  ;;  %v2971_v30 = vld [vmem:[#allocation2 + $0x92] sm:$0xff] }
 0x153   : > { %1937 = vrot.lane.b32.xlu0 %v2936_v28, %s3206_s17 }
 0x154   : > { %v1211_v20 = vpop.permute.xlu1 %1210 }
 0x155   : > { %1278 = vst.msk [vmem:[#allocation3 + $0xe8] sm:$0xff] %vm1248_vm6, %v1211_v20  ;;  %v1346_v31 = vpop.permute.xlu0 %1345  ;;  %v2956_v20 = vld [vmem:[#allocation2 + $0x159] sm:$0xff] }
 0x156   : > { %1389 = vrot.lane.b32.xlu1 %v2951_v52, %s3203_s14  ;;  %1442 = vst.msk [vmem:[#allocation3] sm:$0xff] %vm1441_vm7, %v1346_v31 }
 0x157   : > { %2128 = vrot.lane.b32.xlu0 %v3698_v15, %s3207_s18 }
 0x158   : > { %v1215_v5 = vpop.permute.xlu1 %1214 }
 0x159   : > { %1280 = vst.msk [vmem:[#allocation3 + $0xf8] sm:$0xff] %vm1248_vm6, %v1215_v5  ;;  %v1350_v49 = vpop.permute.xlu0 %1349 }
 0x15a   : > { %1969 = vrot.lane.b32.xlu1 %v2952_v40, %s3206_s17  ;;  %1444 = vst.msk [vmem:[#allocation3 + $0x10] sm:$0xff] %vm1441_vm7, %v1350_v49  ;;  %v2987_v49 = vld [vmem:[#allocation2 + $0x152] sm:$0xff] }
 0x15b   : > { %1359 = vrot.lane.b32.xlu0 %v2936_v28, %s3203_s14 }
 0x15c   : > { %v1348_v55 = vpop.permute.xlu1 %1347 }
 0x15d   : > { %1443 = vst.msk [vmem:[#allocation3 + $0x8] sm:$0xff] %vm1441_vm7, %v1348_v55  ;;  %v1380_v56 = vpop.permute.xlu0 %1379 }
 0x15e   : > { %2160 = vrot.lane.b32.xlu1 %v3735_v0, %s3207_s18  ;;  %1459 = vst.msk [vmem:[#allocation3 + $0x88] sm:$0xff] %vm1441_vm7, %v1380_v56 }
 0x15f   : > { %1550 = vrot.lane.b32.xlu0 %v2873_v9, %s3204_s15 }
 0x160   : > { %v1378_v15 = vpop.permute.xlu1 %1377 }
 0x161   : > { %1458 = vst.msk [vmem:[#allocation3 + $0x80] sm:$0xff] %vm1441_vm7, %v1378_v15  ;;  %v1571_v58 = vpop.permute.xlu0 %1570 }
 0x162   : > { %1391 = vrot.lane.b32.xlu1 %v2952_v40, %s3203_s14  ;;  %1651 = vst.msk [vmem:[#allocation3 + $0x80] sm:$0xff] %vm1634_vm8, %v1571_v58 }
 0x163   : > { %2130 = vrot.lane.b32.xlu0 %v2968_v24, %s3207_s18 }
 0x164   : > { %v1539_v63 = vpop.permute.xlu1 %1538 }
 0x165   : > { %1635 = vst.msk [vmem:[#allocation3] sm:$0xff] %vm1634_vm8, %v1539_v63  ;;  %v1573_v1 = vpop.permute.xlu0 %1572 }
 0x166   : > { %1582 = vrot.lane.b32.xlu1 %v3735_v0, %s3204_s15  ;;  %1652 = vst.msk [vmem:[#allocation3 + $0x88] sm:$0xff] %vm1634_vm8, %v1573_v1 }
 0x167   : > { %1552 = vrot.lane.b32.xlu0 %v2968_v24, %s3204_s15  ;;  %v2972_v24 = vld [vmem:[#allocation2 + $0x9a] sm:$0xff] }
 0x168   : > { %v1541_v33 = vpop.permute.xlu1 %1540 }
 0x169   : > { %1636 = vst.msk [vmem:[#allocation3 + $0x8] sm:$0xff] %vm1634_vm8, %v1541_v33  ;;  %v1767_v2 = vpop.permute.xlu0 %1766 }
 0x16a   : > { %2162 = vrot.lane.b32.xlu1 %v3747_v6, %s3207_s18  ;;  %1847 = vst.msk [vmem:[#allocation3 + $0x80] sm:$0xff] %vm1830_vm9, %v1767_v2  ;;  %v2988_v2 = vld [vmem:[#allocation2 + $0x15a] sm:$0xff] }
 0x16b   : > { %1746 = vrot.lane.b32.xlu0 %v3498_v12, %s3205_s16 }
 0x16c   : > { %v1735_v34 = vpop.permute.xlu1 %1734 }
 0x16d   : > { %1831 = vst.msk [vmem:[#allocation3] sm:$0xff] %vm1830_vm9, %v1735_v34  ;;  %v1769_v0 = vpop.permute.xlu0 %1768  ;;  %v2909_v34 = vld [vmem:[#allocation2 + $0xa8] sm:$0xff] }
 0x16e   : > { %1584 = vrot.lane.b32.xlu1 %v2890_v7, %s3204_s15  ;;  %1848 = vst.msk [vmem:[#allocation3 + $0x88] sm:$0xff] %vm1830_vm9, %v1769_v0 }
 0x16f   : > { %1748 = vrot.lane.b32.xlu0 %v3506_v17, %s3205_s16  ;;  %v2953_v17 = vld [vmem:[#allocation2 + $0x139] sm:$0xff] }
 0x170   : > { %v1737_v10 = vpop.permute.xlu1 %1736 }
 0x171   : > { %1832 = vst.msk [vmem:[#allocation3 + $0x8] sm:$0xff] %vm1830_vm9, %v1737_v10  ;;  %v1960_v6 = vpop.permute.xlu0 %1959 }
 0x172   : > { %1778 = vrot.lane.b32.xlu1 %v3629_v36, %s3205_s16  ;;  %2040 = vst.msk [vmem:[#allocation3 + $0x80] sm:$0xff] %vm2023_vm10, %v1960_v6  ;;  %v2910_v6 = vld [vmem:[#allocation2 + $0xb0] sm:$0xff] }
 0x173   : > { %1939 = vrot.lane.b32.xlu0 %v2937_v8, %s3206_s17 }
 0x174   : > { %v1928_v12 = vpop.permute.xlu1 %1927 }
 0x175   : > { %2024 = vst.msk [vmem:[#allocation3] sm:$0xff] %vm2023_vm10, %v1928_v12  ;;  %v1930_v38 = vpop.permute.xlu0 %1929 }
 0x176   : > { %1780 = vrot.lane.b32.xlu1 %v3631_v37, %s3205_s16  ;;  %2025 = vst.msk [vmem:[#allocation3 + $0x8] sm:$0xff] %vm2023_vm10, %v1930_v38  ;;  %v2925_v38 = vld [vmem:[#allocation2 + $0x168] sm:$0xff] }
 0x177   : > { %1361 = vrot.lane.b32.xlu0 %v2937_v8, %s3203_s14 }
 0x178   : > { %v1382_v23 = vpop.permute.xlu1 %1381 }
 0x179   : > { %1460 = vst.msk [vmem:[#allocation3 + $0x90] sm:$0xff] %vm1441_vm7, %v1382_v23  ;;  %v2121_v36 = vpop.permute.xlu0 %2120  ;;  %v2941_v23 = vld [vmem:[#allocation2 + $0xa9] sm:$0xff] }
 0x17a   : > { %1971 = vrot.lane.b32.xlu1 %v2953_v17, %s3206_s17  ;;  %2217 = vst.msk [vmem:[#allocation3] sm:$0xff] %vm2216_vm11, %v2121_v36  ;;  %v2926_v36 = vld [vmem:[#allocation2 + $0x170] sm:$0xff] }
 0x17b   : > { %1941 = vrot.lane.b32.xlu0 %v2938_v50, %s3206_s17 }
 0x17c   : > { %v1962_v59 = vpop.permute.xlu1 %1961 }
 0x17d   : > { %2041 = vst.msk [vmem:[#allocation3 + $0x88] sm:$0xff] %vm2023_vm10, %v1962_v59  ;;  %v1352_v37 = vpop.permute.xlu0 %1351 }
 0x17e   : > { %1393 = vrot.lane.b32.xlu1 %v2953_v17, %s3203_s14  ;;  %1445 = vst.msk [vmem:[#allocation3 + $0x18] sm:$0xff] %vm1441_vm7, %v1352_v37  ;;  %v2957_v37 = vld [vmem:[#allocation2 + $0x169] sm:$0xff] }
 0x17f   : > { %2132 = vrot.lane.b32.xlu0 %v2969_v14, %s3207_s18 }
 0x180   : > { %v2153_v45 = vpop.permute.xlu1 %2152 }
 0x181   : > { %2233 = vst.msk [vmem:[#allocation3 + $0x80] sm:$0xff] %vm2216_vm11, %v2153_v45  ;;  %v1543_v41 = vpop.permute.xlu0 %1542  ;;  %v2249_v62 = vld [vmem:[#allocation3] sm:$0xff] }
 0x182   : > { %1973 = vrot.lane.b32.xlu1 %v2954_v39, %s3206_s17  ;;  %1637 = vst.msk [vmem:[#allocation3 + $0x10] sm:$0xff] %vm1634_vm8, %v1543_v41  ;;  %3080 = vmatprep.mubr.msk.f32.mxu0 %vm2293_vm12, %v2249_v62  ;;  %v2942_v45 = vld [vmem:[#allocation2 + $0xb1] sm:$0xff] }
 0x183   : > { %1363 = vrot.lane.b32.xlu0 %v2938_v50, %s3203_s14 }
 0x184   : > { %v1384_v46 = vpop.permute.xlu1 %1383 }
 0x185   : > { %1461 = vst.msk [vmem:[#allocation3 + $0x98] sm:$0xff] %vm1441_vm7, %v1384_v46  ;;  %v2123_v25 = vpop.permute.xlu0 %2122 }
 0x186   : > { %2164 = vrot.lane.b32.xlu1 %v2985_v42, %s3207_s18  ;;  %2218 = vst.msk [vmem:[#allocation3 + $0x8] sm:$0xff] %vm2216_vm11, %v2123_v25  ;;  %v2958_v25 = vld [vmem:[#allocation2 + $0x171] sm:$0xff] }
 0x187   : > { %1554 = vrot.lane.b32.xlu0 %v2969_v14, %s3204_s15 }
 0x188   : > { %v1575_v47 = vpop.permute.xlu1 %1574  ;;  %v2265_v18 = vld [vmem:[#allocation3 + $0x80] sm:$0xff] }
 0x189   : > { %1653 = vst.msk [vmem:[#allocation3 + $0x90] sm:$0xff] %vm1634_vm8, %v1575_v47  ;;  %3104 = vmatprep.mubr.msk.f32.mxu1 %vm2293_vm12, %v2265_v18  ;;  %v1545_v53 = vpop.permute.xlu0 %1544 }
 0x18a   : > { %1395 = vrot.lane.b32.xlu1 %v2954_v39, %s3203_s14  ;;  %1638 = vst.msk [vmem:[#allocation3 + $0x18] sm:$0xff] %vm1634_vm8, %v1545_v53  ;;  %v2989_v53 = vld [vmem:[#allocation2 + $0x16a] sm:$0xff] }
 0x18b   : > { %2134 = vrot.lane.b32.xlu0 %v2970_v26, %s3207_s18 }
 0x18c   : > { %v2155_v54 = vpop.permute.xlu1 %2154 }
 0x18d   : > { %2234 = vst.msk [vmem:[#allocation3 + $0x88] sm:$0xff] %vm2216_vm11, %v2155_v54  ;;  %v1739_v32 = vpop.permute.xlu0 %1738  ;;  %v2250_v27 = vld [vmem:[#allocation3 + $0x8] sm:$0xff] }
 0x18e   : > { %1586 = vrot.lane.b32.xlu1 %v2985_v42, %s3204_s15  ;;  %1833 = vst.msk [vmem:[#allocation3 + $0x10] sm:$0xff] %vm1830_vm9, %v1739_v32  ;;  %3081 = vmatmul.mubr.msk.f32.vlgmr.msra.gmra.mrb[0].mxu0 %vm2293_vm12, %v2250_v27  ;;  %v2973_v42 = vld [vmem:[#allocation2 + $0xaa] sm:$0xff] }
 0x18f   : > { %1556 = vrot.lane.b32.xlu0 %v2970_v26, %s3204_s15 }
 0x190   : > { %v1577_v48 = vpop.permute.xlu1 %1576 }
 0x191   : > { %1654 = vst.msk [vmem:[#allocation3 + $0x98] sm:$0xff] %vm1634_vm8, %v1577_v48  ;;  %v1741_v22 = vpop.permute.xlu0 %1740  ;;  %v2974_v48 = vld [vmem:[#allocation2 + $0xb2] sm:$0xff] }
 0x192   : > { %2166 = vrot.lane.b32.xlu1 %v2986_v19, %s3207_s18  ;;  %1834 = vst.msk [vmem:[#allocation3 + $0x18] sm:$0xff] %vm1830_vm9, %v1741_v22 }
 0x193   : > { %1750 = vrot.lane.b32.xlu0 %v2907_v29, %s3205_s16 }
 0x194   : > { %v1771_v57 = vpop.permute.xlu1 %1770  ;;  %v2266_v13 = vld [vmem:[#allocation3 + $0x88] sm:$0xff] }
 0x195   : > { %1849 = vst.msk [vmem:[#allocation3 + $0x90] sm:$0xff] %vm1830_vm9, %v1771_v57  ;;  %3105 = vmatmul.mubr.msk.f32.vlgmr.msra.gmra.mrb[0].mxu1 %vm2293_vm12, %v2266_v13  ;;  %v1932_v60 = vpop.permute.xlu0 %1931 }
 0x196   : > { %1588 = vrot.lane.b32.xlu1 %v2986_v19, %s3204_s15  ;;  %2026 = vst.msk [vmem:[#allocation3 + $0x10] sm:$0xff] %vm2023_vm10, %v1932_v60 }
 0x197   : > { %1752 = vrot.lane.b32.xlu0 %v2908_v4, %s3205_s16  ;;  %v2990_v4 = vld [vmem:[#allocation2 + $0x172] sm:$0xff] }
 0x198   : > { %v1773_v61 = vpop.permute.xlu1 %1772 }
 0x199   : > { %1850 = vst.msk [vmem:[#allocation3 + $0x98] sm:$0xff] %vm1830_vm9, %v1773_v61  ;;  %v1354_v11 = vpop.permute.xlu0 %1353  ;;  %v2911_v61 = vld [vmem:[#allocation2 + $0xc0] sm:$0xff] }
 0x19a   : > { %1782 = vrot.lane.b32.xlu1 %v3643_v43, %s3205_s16  ;;  %1446 = vst.msk [vmem:[#allocation3 + $0x20] sm:$0xff] %vm1441_vm7, %v1354_v11 }
 0x19b   : > { %1943 = vrot.lane.b32.xlu0 %v2939_v21, %s3206_s17 }
 0x19c   : > { %v1964_v16 = vpop.permute.xlu1 %1963 }
 0x19d   : > { %2042 = vst.msk [vmem:[#allocation3 + $0x90] sm:$0xff] %vm2023_vm10, %v1964_v16  ;;  %v1934_v51 = vpop.permute.xlu0 %1933 }
 0x19e   : > { %1784 = vrot.lane.b32.xlu1 %v3645_v44, %s3205_s16  ;;  %2027 = vst.msk [vmem:[#allocation3 + $0x18] sm:$0xff] %vm2023_vm10, %v1934_v51  ;;  %v2912_v51 = vld [vmem:[#allocation2 + $0xc8] sm:$0xff] }
 0x19f   : > { %1365 = vrot.lane.b32.xlu0 %v2939_v21, %s3203_s14 }
 0x1a0   : > { %v1386_v52 = vpop.permute.xlu1 %1385 }
 0x1a1   : > { %1462 = vst.msk [vmem:[#allocation3 + $0xa0] sm:$0xff] %vm1441_vm7, %v1386_v52  ;;  %v2125_v43 = vpop.permute.xlu0 %2124  ;;  %v2927_v52 = vld [vmem:[#allocation2 + $0x180] sm:$0xff] }
 0x1a2   : > { %1975 = vrot.lane.b32.xlu1 %v2955_v3, %s3206_s17  ;;  %2219 = vst.msk [vmem:[#allocation3 + $0x10] sm:$0xff] %vm2216_vm11, %v2125_v43  ;;  %v2943_v43 = vld [vmem:[#allocation2 + $0xc1] sm:$0xff] }
 0x1a3   : > { %1945 = vrot.lane.b32.xlu0 %v2940_v35, %s3206_s17 }
 0x1a4   : > { %v1966_v28 = vpop.permute.xlu1 %1965 }
 0x1a5   : > { %2043 = vst.msk [vmem:[#allocation3 + $0x98] sm:$0xff] %vm2023_vm10, %v1966_v28  ;;  %v1356_v44 = vpop.permute.xlu0 %1355 }
 0x1a6   : > { %1397 = vrot.lane.b32.xlu1 %v2955_v3, %s3203_s14  ;;  %1447 = vst.msk [vmem:[#allocation3 + $0x28] sm:$0xff] %vm1441_vm7, %v1356_v44 }
 0x1a7   : > { %2136 = vrot.lane.b32.xlu0 %v2971_v30, %s3207_s18 }
 0x1a8   : > { %v2157_v31 = vpop.permute.xlu1 %2156 }
 0x1a9   : > { %2235 = vst.msk [vmem:[#allocation3 + $0x90] sm:$0xff] %vm2216_vm11, %v2157_v31  ;;  %v1547_v40 = vpop.permute.xlu0 %1546  ;;  %v2251_v5 = vld [vmem:[#allocation3 + $0x10] sm:$0xff] }
 0x1aa   : > { %1977 = vrot.lane.b32.xlu1 %v2956_v20, %s3206_s17  ;;  %1639 = vst.msk [vmem:[#allocation3 + $0x20] sm:$0xff] %vm1634_vm8, %v1547_v40  ;;  %3083 = vmatprep.mubr.msk.f32.mxu0 %vm2293_vm12, %v2251_v5  ;;  %v2959_v31 = vld [vmem:[#allocation2 + $0x181] sm:$0xff]  ;;  %v2944_v5 = vld [vmem:[#allocation2 + $0xc9] sm:$0xff] }
 0x1ab   : > { %1367 = vrot.lane.b32.xlu0 %v2940_v35, %s3203_s14 }
 0x1ac   : > { %v1388_v55 = vpop.permute.xlu1 %1387 }
 0x1ad   : > { %1463 = vst.msk [vmem:[#allocation3 + $0xa8] sm:$0xff] %vm1441_vm7, %v1388_v55  ;;  %v2127_v9 = vpop.permute.xlu0 %2126 }
 0x1ae   : > { %2168 = vrot.lane.b32.xlu1 %v2987_v49, %s3207_s18  ;;  %2220 = vst.msk [vmem:[#allocation3 + $0x18] sm:$0xff] %vm2216_vm11, %v2127_v9  ;;  %v2975_v9 = vld [vmem:[#allocation2 + $0xc2] sm:$0xff] }
 0x1af   : > { %1558 = vrot.lane.b32.xlu0 %v2971_v30, %s3204_s15  ;;  %v2928_v30 = vld [vmem:[#allocation2 + $0x188] sm:$0xff] }
 0x1b0   : > { %v1579_v56 = vpop.permute.xlu1 %1578  ;;  %v2267_v15 = vld [vmem:[#allocation3 + $0x90] sm:$0xff] }
 0x1b1   : > { %1655 = vst.msk [vmem:[#allocation3 + $0xa0] sm:$0xff] %vm1634_vm8, %v1579_v56  ;;  %3107 = vmatprep.mubr.msk.f32.mxu1 %vm2293_vm12, %v2267_v15  ;;  %v1549_v58 = vpop.permute.xlu0 %1548  ;;  %v2960_v15 = vld [vmem:[#allocation2 + $0x189] sm:$0xff] }
 0x1b2   : > { %1399 = vrot.lane.b32.xlu1 %v2956_v20, %s3203_s14  ;;  %1640 = vst.msk [vmem:[#allocation3 + $0x28] sm:$0xff] %vm1634_vm8, %v1549_v58 }
 0x1b3   : > { %2138 = vrot.lane.b32.xlu0 %v2972_v24, %s3207_s18 }
 0x1b4   : > { %v2159_v63 = vpop.permute.xlu1 %2158 }
 0x1b5   : > { %2236 = vst.msk [vmem:[#allocation3 + $0x98] sm:$0xff] %vm2216_vm11, %v2159_v63  ;;  %v1743_v1 = vpop.permute.xlu0 %1742  ;;  %v2252_v33 = vld [vmem:[#allocation3 + $0x18] sm:$0xff] }
 0x1b6   : > { %1590 = vrot.lane.b32.xlu1 %v2987_v49, %s3204_s15  ;;  %1835 = vst.msk [vmem:[#allocation3 + $0x20] sm:$0xff] %vm1830_vm9, %v1743_v1  ;;  %3084 = vmatmul.mubr.msk.f32.gmra.mrb[2].mxu0 %vm2293_vm12, %v2252_v33  ;;  %v2991_v1 = vld [vmem:[#allocation2 + $0x182] sm:$0xff] }
 0x1b7   : > { %1560 = vrot.lane.b32.xlu0 %v2972_v24, %s3204_s15 }
 0x1b8   : > { %v1581_v7 = vpop.permute.xlu1 %1580 }
 0x1b9   : > { %1656 = vst.msk [vmem:[#allocation3 + $0xa8] sm:$0xff] %vm1634_vm8, %v1581_v7  ;;  %v1745_v0 = vpop.permute.xlu0 %1744 }
 0x1ba   : > { %2170 = vrot.lane.b32.xlu1 %v2988_v2, %s3207_s18  ;;  %1836 = vst.msk [vmem:[#allocation3 + $0x28] sm:$0xff] %vm1830_vm9, %v1745_v0  ;;  %v2976_v0 = vld [vmem:[#allocation2 + $0xca] sm:$0xff] }
 0x1bb   : > { %1754 = vrot.lane.b32.xlu0 %v2909_v34, %s3205_s16 }
 0x1bc   : > { %v1775_v10 = vpop.permute.xlu1 %1774  ;;  %v2268_v8 = vld [vmem:[#allocation3 + $0x98] sm:$0xff] }
 0x1bd   : > { %1851 = vst.msk [vmem:[#allocation3 + $0xa0] sm:$0xff] %vm1830_vm9, %v1775_v10  ;;  %3108 = vmatmul.mubr.msk.f32.gmra.mrb[2].mxu1 %vm2293_vm12, %v2268_v8  ;;  %v1936_v12 = vpop.permute.xlu0 %1935 }
 0x1be   : > { %1592 = vrot.lane.b32.xlu1 %v2988_v2, %s3204_s15  ;;  %2028 = vst.msk [vmem:[#allocation3 + $0x20] sm:$0xff] %vm2023_vm10, %v1936_v12 }
 0x1bf   : > { %1756 = vrot.lane.b32.xlu0 %v2910_v6, %s3205_s16 }
 0x1c0   : > { %v1777_v17 = vpop.permute.xlu1 %1776 }
 0x1c1   : > { %1852 = vst.msk [vmem:[#allocation3 + $0xa8] sm:$0xff] %vm1830_vm9, %v1777_v17  ;;  %v1358_v50 = vpop.permute.xlu0 %1357 }
 0x1c2   : > { %1786 = vrot.lane.b32.xlu1 %v2925_v38, %s3205_s16  ;;  %1448 = vst.msk [vmem:[#allocation3 + $0x30] sm:$0xff] %vm1441_vm7, %v1358_v50  ;;  %v2992_v38 = vld [vmem:[#allocation2 + $0x18a] sm:$0xff] }
 0x1c3   : > { %1947 = vrot.lane.b32.xlu0 %v2941_v23, %s3206_s17 }
 0x1c4   : > { %v1968_v59 = vpop.permute.xlu1 %1967 }
 0x1c5   : > { %2044 = vst.msk [vmem:[#allocation3 + $0xa0] sm:$0xff] %vm2023_vm10, %v1968_v59  ;;  %v1938_v14 = vpop.permute.xlu0 %1937 }
 0x1c6   : > { %1788 = vrot.lane.b32.xlu1 %v2926_v36, %s3205_s16  ;;  %2029 = vst.msk [vmem:[#allocation3 + $0x28] sm:$0xff] %vm2023_vm10, %v1938_v14  ;;  %v2914_v14 = vld [vmem:[#allocation2 + $0xe0] sm:$0xff] }
 0x1c7   : > { %1369 = vrot.lane.b32.xlu0 %v2941_v23, %s3203_s14  ;;  %v2913_v23 = vld [vmem:[#allocation2 + $0xd8] sm:$0xff] }
 0x1c8   : > { %v1390_v39 = vpop.permute.xlu1 %1389 }
 0x1c9   : > { %1464 = vst.msk [vmem:[#allocation3 + $0xb0] sm:$0xff] %vm1441_vm7, %v1390_v39  ;;  %v2129_v41 = vpop.permute.xlu0 %2128  ;;  %v2929_v39 = vld [vmem:[#allocation2 + $0x198] sm:$0xff] }
 0x1ca   : > { %1979 = vrot.lane.b32.xlu1 %v2957_v37, %s3206_s17  ;;  %2221 = vst.msk [vmem:[#allocation3 + $0x20] sm:$0xff] %vm2216_vm11, %v2129_v41  ;;  %v2945_v41 = vld [vmem:[#allocation2 + $0xd9] sm:$0xff] }
 0x1cb   : > { %1949 = vrot.lane.b32.xlu0 %v2942_v45, %s3206_s17 }
 0x1cc   : > { %v1970_v62 = vpop.permute.xlu1 %1969 }
 0x1cd   : > { %2045 = vst.msk [vmem:[#allocation3 + $0xa8] sm:$0xff] %vm2023_vm10, %v1970_v62  ;;  %v1360_v46 = vpop.permute.xlu0 %1359 }
 0x1ce   : > { %1401 = vrot.lane.b32.xlu1 %v2957_v37, %s3203_s14  ;;  %1449 = vst.msk [vmem:[#allocation3 + $0x38] sm:$0xff] %vm1441_vm7, %v1360_v46 }
 0x1cf   : > { %2140 = vrot.lane.b32.xlu0 %v2973_v42, %s3207_s18 }
 0x1d0   : > { %v2161_v47 = vpop.permute.xlu1 %2160 }
 0x1d1   : > { %2237 = vst.msk [vmem:[#allocation3 + $0xa0] sm:$0xff] %vm2216_vm11, %v2161_v47  ;;  %v1551_v18 = vpop.permute.xlu0 %1550  ;;  %v2253_v26 = vld [vmem:[#allocation3 + $0x20] sm:$0xff] }
 0x1d2   : > { %1981 = vrot.lane.b32.xlu1 %v2958_v25, %s3206_s17  ;;  %1641 = vst.msk [vmem:[#allocation3 + $0x30] sm:$0xff] %vm1634_vm8, %v1551_v18  ;;  %3086 = vmatprep.mubr.msk.f32.mxu0 %vm2293_vm12, %v2253_v26  ;;  %v2961_v18 = vld [vmem:[#allocation2 + $0x199] sm:$0xff] }
 0x1d3   : > { %1371 = vrot.lane.b32.xlu0 %v2942_v45, %s3203_s14 }
 0x1d4   : > { %v1392_v54 = vpop.permute.xlu1 %1391 }
 0x1d5   : > { %1465 = vst.msk [vmem:[#allocation3 + $0xb8] sm:$0xff] %vm1441_vm7, %v1392_v54  ;;  %v2131_v32 = vpop.permute.xlu0 %2130 }
 0x1d6   : > { %2172 = vrot.lane.b32.xlu1 %v2989_v53, %s3207_s18  ;;  %2222 = vst.msk [vmem:[#allocation3 + $0x28] sm:$0xff] %vm2216_vm11, %v2131_v32  ;;  %v2962_v32 = vld [vmem:[#allocation2 + $0x1a1] sm:$0xff] }
 0x1d7   : > { %1562 = vrot.lane.b32.xlu0 %v2973_v42, %s3204_s15  ;;  %v2930_v42 = vld [vmem:[#allocation2 + $0x1a0] sm:$0xff] }
 0x1d8   : > { %v1583_v27 = vpop.permute.xlu1 %1582  ;;  %v2269_v19 = vld [vmem:[#allocation3 + $0xa0] sm:$0xff] }
 0x1d9   : > { %1657 = vst.msk [vmem:[#allocation3 + $0xb0] sm:$0xff] %vm1634_vm8, %v1583_v27  ;;  %3110 = vmatprep.mubr.msk.f32.mxu1 %vm2293_vm12, %v2269_v19  ;;  %v1553_v29 = vpop.permute.xlu0 %1552  ;;  %v2978_v19 = vld [vmem:[#allocation2 + $0xe2] sm:$0xff] }
 0x1da   : > { %1403 = vrot.lane.b32.xlu1 %v2958_v25, %s3203_s14  ;;  %1642 = vst.msk [vmem:[#allocation3 + $0x38] sm:$0xff] %vm1634_vm8, %v1553_v29  ;;  %v2946_v25 = vld [vmem:[#allocation2 + $0xe1] sm:$0xff] }
 0x1db   : > { %2142 = vrot.lane.b32.xlu0 %v2974_v48, %s3207_s18  ;;  %v2993_v29 = vld [vmem:[#allocation2 + $0x19a] sm:$0xff] }
 0x1dc   : > { %v2163_v22 = vpop.permute.xlu1 %2162 }
 0x1dd   : > { %2238 = vst.msk [vmem:[#allocation3 + $0xa8] sm:$0xff] %vm2216_vm11, %v2163_v22  ;;  %v1747_v57 = vpop.permute.xlu0 %1746  ;;  %v2254_v13 = vld [vmem:[#allocation3 + $0x28] sm:$0xff] }
 0x1de   : > { %1594 = vrot.lane.b32.xlu1 %v2989_v53, %s3204_s15  ;;  %1837 = vst.msk [vmem:[#allocation3 + $0x30] sm:$0xff] %vm1830_vm9, %v1747_v57  ;;  %3087 = vmatmul.mubr.msk.f32.gmra.mrb[4].mxu0 %vm2293_vm12, %v2254_v13  ;;  %v2977_v53 = vld [vmem:[#allocation2 + $0xda] sm:$0xff] }
 0x1df   : > { %1564 = vrot.lane.b32.xlu0 %v2974_v48, %s3204_s15 }
 0x1e0   : > { %v1585_v60 = vpop.permute.xlu1 %1584 }
 0x1e1   : > { %1658 = vst.msk [vmem:[#allocation3 + $0xb8] sm:$0xff] %vm1634_vm8, %v1585_v60  ;;  %v1749_v21 = vpop.permute.xlu0 %1748 }
 0x1e2   : > { %2174 = vrot.lane.b32.xlu1 %v2990_v4, %s3207_s18  ;;  %1838 = vst.msk [vmem:[#allocation3 + $0x38] sm:$0xff] %vm1830_vm9, %v1749_v21 }
 0x1e3   : > { %1758 = vrot.lane.b32.xlu0 %v2911_v61, %s3205_s16 }
 0x1e4   : > { %v1779_v11 = vpop.permute.xlu1 %1778  ;;  %v2270_v16 = vld [vmem:[#allocation3 + $0xa8] sm:$0xff] }
 0x1e5   : > { %1853 = vst.msk [vmem:[#allocation3 + $0xb0] sm:$0xff] %vm1830_vm9, %v1779_v11  ;;  %3111 = vmatmul.mubr.msk.f32.gmra.mrb[4].mxu1 %vm2293_vm12, %v2270_v16  ;;  %v1940_v3 = vpop.permute.xlu0 %1939 }
 0x1e6   : > { %1596 = vrot.lane.b32.xlu1 %v2990_v4, %s3204_s15  ;;  %2030 = vst.msk [vmem:[#allocation3 + $0x30] sm:$0xff] %vm2023_vm10, %v1940_v3  ;;  %v2994_v4 = vld [vmem:[#allocation2 + $0x1a2] sm:$0xff] }
 0x1e7   : > { %1760 = vrot.lane.b32.xlu0 %v2912_v51, %s3205_s16 }
 0x1e8   : > { %v1781_v35 = vpop.permute.xlu1 %1780 }
 0x1e9   : > { %1854 = vst.msk [vmem:[#allocation3 + $0xb8] sm:$0xff] %vm1830_vm9, %v1781_v35  ;;  %v1362_v28 = vpop.permute.xlu0 %1361 }
 0x1ea   : > { %1790 = vrot.lane.b32.xlu1 %v2927_v52, %s3205_s16  ;;  %1450 = vst.msk [vmem:[#allocation3 + $0x40] sm:$0xff] %vm1441_vm7, %v1362_v28 }
 0x1eb   : > { %1951 = vrot.lane.b32.xlu0 %v2943_v43, %s3206_s17 }
 0x1ec   : > { %v1972_v44 = vpop.permute.xlu1 %1971 }
 0x1ed   : > { %2046 = vst.msk [vmem:[#allocation3 + $0xb0] sm:$0xff] %vm2023_vm10, %v1972_v44  ;;  %v1942_v20 = vpop.permute.xlu0 %1941 }
 0x1ee   : > { %1792 = vrot.lane.b32.xlu1 %v2928_v30, %s3205_s16  ;;  %2031 = vst.msk [vmem:[#allocation3 + $0x38] sm:$0xff] %vm2023_vm10, %v1942_v20 }
 0x1ef   : > { %1373 = vrot.lane.b32.xlu0 %v2943_v43, %s3203_s14 }
 0x1f0   : > { %v1394_v40 = vpop.permute.xlu1 %1393 }
 0x1f1   : > { %1466 = vst.msk [vmem:[#allocation3 + $0xc0] sm:$0xff] %vm1441_vm7, %v1394_v40  ;;  %v2133_v49 = vpop.permute.xlu0 %2132 }
 0x1f2   : > { %1983 = vrot.lane.b32.xlu1 %v2959_v31, %s3206_s17  ;;  %2223 = vst.msk [vmem:[#allocation3 + $0x30] sm:$0xff] %vm2216_vm11, %v2133_v49 }
 0x1f3   : > { %1953 = vrot.lane.b32.xlu0 %v2944_v5, %s3206_s17 }
 0x1f4   : > { %v1974_v55 = vpop.permute.xlu1 %1973 }
 0x1f5   : > { %2047 = vst.msk [vmem:[#allocation3 + $0xb8] sm:$0xff] %vm2023_vm10, %v1974_v55  ;;  %v1364_v56 = vpop.permute.xlu0 %1363 }
 0x1f6   : > { %1405 = vrot.lane.b32.xlu1 %v2959_v31, %s3203_s14  ;;  %1451 = vst.msk [vmem:[#allocation3 + $0x48] sm:$0xff] %vm1441_vm7, %v1364_v56 }
 0x1f7   : > { %2144 = vrot.lane.b32.xlu0 %v2975_v9, %s3207_s18 }
 0x1f8   : > { %v2165_v24 = vpop.permute.xlu1 %2164 }
 0x1f9   : > { %2239 = vst.msk [vmem:[#allocation3 + $0xb0] sm:$0xff] %vm2216_vm11, %v2165_v24  ;;  %v1555_v58 = vpop.permute.xlu0 %1554  ;;  %v2255_v63 = vld [vmem:[#allocation3 + $0x30] sm:$0xff] }
 0x1fa   : > { %1985 = vrot.lane.b32.xlu1 %v2960_v15, %s3206_s17  ;;  %1643 = vst.msk [vmem:[#allocation3 + $0x40] sm:$0xff] %vm1634_vm8, %v1555_v58  ;;  %3089 = vmatprep.mubr.msk.f32.mxu0 %vm2293_vm12, %v2255_v63 }
 0x1fb   : > { %1375 = vrot.lane.b32.xlu0 %v2944_v5, %s3203_s14 }
 0x1fc   : > { %v1396_v33 = vpop.permute.xlu1 %1395 }
 0x1fd   : > { %1467 = vst.msk [vmem:[#allocation3 + $0xc8] sm:$0xff] %vm1441_vm7, %v1396_v33  ;;  %v2135_v2 = vpop.permute.xlu0 %2134 }
 0x1fe   : > { %2176 = vrot.lane.b32.xlu1 %v2991_v1, %s3207_s18  ;;  %2224 = vst.msk [vmem:[#allocation3 + $0x38] sm:$0xff] %vm2216_vm11, %v2135_v2 }
 0x1ff   : > { %1566 = vrot.lane.b32.xlu0 %v2975_v9, %s3204_s15 }
 0x200   : > { %v1587_v7 = vpop.permute.xlu1 %1586  ;;  %v2271_v34 = vld [vmem:[#allocation3 + $0xb0] sm:$0xff] }
 0x201   : > { %1659 = vst.msk [vmem:[#allocation3 + $0xc0] sm:$0xff] %vm1634_vm8, %v1587_v7  ;;  %3113 = vmatprep.mubr.msk.f32.mxu1 %vm2293_vm12, %v2271_v34  ;;  %v1557_v10 = vpop.permute.xlu0 %1556 }
 0x202   : > { %1407 = vrot.lane.b32.xlu1 %v2960_v15, %s3203_s14  ;;  %1644 = vst.msk [vmem:[#allocation3 + $0x48] sm:$0xff] %vm1634_vm8, %v1557_v10  ;;  %s4304_s14 = scalar_lea.vmem %s4452_s6, %s3031_s25 }
 0x203   : > { %2146 = vrot.lane.b32.xlu0 %v2976_v0, %s3207_s18 }
 0x204   : > { %v2167_v8 = vpop.permute.xlu1 %2166 }
 0x205   : > { %2240 = vst.msk [vmem:[#allocation3 + $0xb8] sm:$0xff] %vm2216_vm11, %v2167_v8  ;;  %v1751_v6 = vpop.permute.xlu0 %1750  ;;  %v2256_v12 = vld [vmem:[#allocation3 + $0x38] sm:$0xff] }
 0x206   : > { %1598 = vrot.lane.b32.xlu1 %v2991_v1, %s3204_s15  ;;  %1839 = vst.msk [vmem:[#allocation3 + $0x40] sm:$0xff] %vm1830_vm9, %v1751_v6  ;;  %3090 = vmatmul.mubr.msk.f32.gmra.mrb[6].mxu0 %vm2293_vm12, %v2256_v12 }
 0x207   : > { %1568 = vrot.lane.b32.xlu0 %v2976_v0, %s3204_s15 }
 0x208   : > { %v1589_v17 = vpop.permute.xlu1 %1588 }
 0x209   : > { %1660 = vst.msk [vmem:[#allocation3 + $0xc8] sm:$0xff] %vm1634_vm8, %v1589_v17  ;;  %v1753_v50 = vpop.permute.xlu0 %1752 }
 0x20a   : > { %2178 = vrot.lane.b32.xlu1 %v2992_v38, %s3207_s18  ;;  %1840 = vst.msk [vmem:[#allocation3 + $0x48] sm:$0xff] %vm1830_vm9, %v1753_v50 }
 0x20b   : > { %1762 = vrot.lane.b32.xlu0 %v2913_v23, %s3205_s16  ;;  %v4296_v23 = vld [vmem:[%s4451_s5] ss:$0 sm:$0xff] }
 0x20c   : > { %v1783_v36 = vpop.permute.xlu1 %1782  ;;  %v2272_v59 = vld [vmem:[#allocation3 + $0xb8] sm:$0xff] }
 0x20d   : > { %1855 = vst.msk [vmem:[#allocation3 + $0xc0] sm:$0xff] %vm1830_vm9, %v1783_v36  ;;  %3114 = vmatmul.mubr.msk.f32.gmra.mrb[6].mxu1 %vm2293_vm12, %v2272_v59  ;;  %v1944_v37 = vpop.permute.xlu0 %1943 }
 0x20e   : > { %1600 = vrot.lane.b32.xlu1 %v2992_v38, %s3204_s15  ;;  %2032 = vst.msk [vmem:[#allocation3 + $0x40] sm:$0xff] %vm2023_vm10, %v1944_v37 }
 0x20f   : > { %1764 = vrot.lane.b32.xlu0 %v2914_v14, %s3205_s16 }
 0x210   : > { %v1785_v45 = vpop.permute.xlu1 %1784 }
 0x211   : > { %1856 = vst.msk [vmem:[#allocation3 + $0xc8] sm:$0xff] %vm1830_vm9, %v1785_v45  ;;  %v1366_v62 = vpop.permute.xlu0 %1365 }
 0x212   : > { %1794 = vrot.lane.b32.xlu1 %v2929_v39, %s3205_s16  ;;  %1452 = vst.msk [vmem:[#allocation3 + $0x50] sm:$0xff] %vm1441_vm7, %v1366_v62 }
 0x213   : > { %1955 = vrot.lane.b32.xlu0 %v2945_v41, %s3206_s17 }
 0x214   : > { %v1976_v46 = vpop.permute.xlu1 %1975 }
 0x215   : > { %2048 = vst.msk [vmem:[#allocation3 + $0xc0] sm:$0xff] %vm2023_vm10, %v1976_v46  ;;  %v1946_v47 = vpop.permute.xlu0 %1945 }
 0x216   : > { %1796 = vrot.lane.b32.xlu1 %v2930_v42, %s3205_s16  ;;  %2033 = vst.msk [vmem:[#allocation3 + $0x48] sm:$0xff] %vm2023_vm10, %v1946_v47 }
 0x217   : > { %1957 = vrot.lane.b32.xlu0 %v2946_v25, %s3206_s17 }
 0x218   : > { %v1398_v26 = vpop.permute.xlu1 %1397 }
 0x219   : > { %1468 = vst.msk [vmem:[#allocation3 + $0xd0] sm:$0xff] %vm1441_vm7, %v1398_v26  ;;  %v2137_v54 = vpop.permute.xlu0 %2136 }
 0x21a   : > { %1987 = vrot.lane.b32.xlu1 %v2961_v18, %s3206_s17  ;;  %2225 = vst.msk [vmem:[#allocation3 + $0x40] sm:$0xff] %vm2216_vm11, %v2137_v54 }
 0x21b   : > { %2148 = vrot.lane.b32.xlu0 %v2977_v53, %s3207_s18 }
 0x21c   : > { %v1978_v27 = vpop.permute.xlu1 %1977 }
 0x21d   : > { %2049 = vst.msk [vmem:[#allocation3 + $0xc8] sm:$0xff] %vm2023_vm10, %v1978_v27  ;;  %v1368_v48 = vpop.permute.xlu0 %1367 }
 0x21e   : > { %1989 = vrot.lane.b32.xlu1 %v2962_v32, %s3206_s17  ;;  %1453 = vst.msk [vmem:[#allocation3 + $0x58] sm:$0xff] %vm1441_vm7, %v1368_v48 }
 0x21f   : > { %2150 = vrot.lane.b32.xlu0 %v2978_v19, %s3207_s18 }
 0x220   : > { %v2169_v22 = vpop.permute.xlu1 %2168 }
 0x221   : > { %2241 = vst.msk [vmem:[#allocation3 + $0xc0] sm:$0xff] %vm2216_vm11, %v2169_v22  ;;  %v1559_v57 = vpop.permute.xlu0 %1558  ;;  %v2257_v13 = vld [vmem:[#allocation3 + $0x40] sm:$0xff] }
 0x222   : > { %2180 = vrot.lane.b32.xlu1 %v2993_v29, %s3207_s18  ;;  %1645 = vst.msk [vmem:[#allocation3 + $0x50] sm:$0xff] %vm1634_vm8, %v1559_v57  ;;  %3092 = vmatprep.mubr.msk.f32.mxu0 %vm2293_vm12, %v2257_v13 }
 0x224   : > { %v1400_v60 = vpop.permute.xlu1 %1399 }
 0x225   : > { %1469 = vst.msk [vmem:[#allocation3 + $0xd8] sm:$0xff] %vm1441_vm7, %v1400_v60  ;;  %v2139_v61 = vpop.permute.xlu0 %2138 }
 0x226   : > { %2182 = vrot.lane.b32.xlu1 %v2994_v4, %s3207_s18  ;;  %2226 = vst.msk [vmem:[#allocation3 + $0x48] sm:$0xff] %vm2216_vm11, %v2139_v61 }
 0x228   : > { %v1591_v21 = vpop.permute.xlu1 %1590  ;;  %v2273_v11 = vld [vmem:[#allocation3 + $0xc0] sm:$0xff] }
 0x229   : > { %1661 = vst.msk [vmem:[#allocation3 + $0xd0] sm:$0xff] %vm1634_vm8, %v1591_v21  ;;  %3116 = vmatprep.mubr.msk.f32.mxu1 %vm2293_vm12, %v2273_v11  ;;  %v1561_v16 = vpop.permute.xlu0 %1560 }
 0x22a   : > { %1646 = vst.msk [vmem:[#allocation3 + $0x58] sm:$0xff] %vm1634_vm8, %v1561_v16 }
 0x22c   : > { %v2171_v51 = vpop.permute.xlu1 %2170 }
 0x22d   : > { %2242 = vst.msk [vmem:[#allocation3 + $0xc8] sm:$0xff] %vm2216_vm11, %v2171_v51  ;;  %v1755_v3 = vpop.permute.xlu0 %1754  ;;  %v2258_v52 = vld [vmem:[#allocation3 + $0x48] sm:$0xff] }
 0x22e   : > { %1841 = vst.msk [vmem:[#allocation3 + $0x50] sm:$0xff] %vm1830_vm9, %v1755_v3  ;;  %3093 = vmatmul.mubr.msk.f32.gmra.mrb[8].mxu0 %vm2293_vm12, %v2258_v52 }
 0x230   : > { %v1593_v35 = vpop.permute.xlu1 %1592 }
 0x231   : > { %1662 = vst.msk [vmem:[#allocation3 + $0xd8] sm:$0xff] %vm1634_vm8, %v1593_v35  ;;  %v1757_v43 = vpop.permute.xlu0 %1756 }
 0x232   : > { %1842 = vst.msk [vmem:[#allocation3 + $0x58] sm:$0xff] %vm1830_vm9, %v1757_v43 }
 0x234   : > { %v1787_v28 = vpop.permute.xlu1 %1786  ;;  %v2274_v30 = vld [vmem:[#allocation3 + $0xc8] sm:$0xff] }
 0x235   : > { %1857 = vst.msk [vmem:[#allocation3 + $0xd0] sm:$0xff] %vm1830_vm9, %v1787_v28  ;;  %3117 = vmatmul.mubr.msk.f32.gmra.mrb[8].mxu1 %vm2293_vm12, %v2274_v30  ;;  %v1948_v44 = vpop.permute.xlu0 %1947 }
 0x236   : > { %2034 = vst.msk [vmem:[#allocation3 + $0x50] sm:$0xff] %vm2023_vm10, %v1948_v44 }
 0x238   : > { %v1789_v20 = vpop.permute.xlu1 %1788 }
 0x239   : > { %1858 = vst.msk [vmem:[#allocation3 + $0xd8] sm:$0xff] %vm1830_vm9, %v1789_v20  ;;  %v1370_v31 = vpop.permute.xlu0 %1369 }
 0x23a   : > { %1454 = vst.msk [vmem:[#allocation3 + $0x60] sm:$0xff] %vm1441_vm7, %v1370_v31 }
 0x23c   : > { %v1980_v40 = vpop.permute.xlu1 %1979 }
 0x23d   : > { %2050 = vst.msk [vmem:[#allocation3 + $0xd0] sm:$0xff] %vm2023_vm10, %v1980_v40  ;;  %v1950_v5 = vpop.permute.xlu0 %1949 }
 0x23e   : > { %2035 = vst.msk [vmem:[#allocation3 + $0x58] sm:$0xff] %vm2023_vm10, %v1950_v5 }
 0x240   : > { %v1402_v49 = vpop.permute.xlu1 %1401 }
 0x241   : > { %1470 = vst.msk [vmem:[#allocation3 + $0xe0] sm:$0xff] %vm1441_vm7, %v1402_v49  ;;  %v2141_v55 = vpop.permute.xlu0 %2140 }
 0x242   : > { %2227 = vst.msk [vmem:[#allocation3 + $0x50] sm:$0xff] %vm2216_vm11, %v2141_v55 }
 0x244   : > { %v1982_v9 = vpop.permute.xlu1 %1981 }
 0x245   : > { %2051 = vst.msk [vmem:[#allocation3 + $0xd8] sm:$0xff] %vm2023_vm10, %v1982_v9  ;;  %v1372_v56 = vpop.permute.xlu0 %1371 }
 0x246   : > { %1455 = vst.msk [vmem:[#allocation3 + $0x68] sm:$0xff] %vm1441_vm7, %v1372_v56 }
 0x248   : > { %v2173_v15 = vpop.permute.xlu1 %2172 }
 0x249   : > { %2243 = vst.msk [vmem:[#allocation3 + $0xd0] sm:$0xff] %vm2216_vm11, %v2173_v15  ;;  %v1563_v24 = vpop.permute.xlu0 %1562  ;;  %v2259_v58 = vld [vmem:[#allocation3 + $0x50] sm:$0xff] }
 0x24a   : > { %1647 = vst.msk [vmem:[#allocation3 + $0x60] sm:$0xff] %vm1634_vm8, %v1563_v24  ;;  %3095 = vmatprep.mubr.msk.f32.mxu0 %vm2293_vm12, %v2259_v58 }
 0x24c   : > { %v1404_v63 = vpop.permute.xlu1 %1403 }
 0x24d   : > { %1471 = vst.msk [vmem:[#allocation3 + $0xe8] sm:$0xff] %vm1441_vm7, %v1404_v63  ;;  %v2143_v1 = vpop.permute.xlu0 %2142 }
 0x24e   : > { %2228 = vst.msk [vmem:[#allocation3 + $0x58] sm:$0xff] %vm2216_vm11, %v2143_v1 }
 0x250   : > { %v1595_v33 = vpop.permute.xlu1 %1594  ;;  %v2275_v2 = vld [vmem:[#allocation3 + $0xd0] sm:$0xff] }
 0x251   : > { %1663 = vst.msk [vmem:[#allocation3 + $0xe0] sm:$0xff] %vm1634_vm8, %v1595_v33  ;;  %3119 = vmatprep.mubr.msk.f32.mxu1 %vm2293_vm12, %v2275_v2  ;;  %v1565_v7 = vpop.permute.xlu0 %1564 }
 0x252   : > { %1648 = vst.msk [vmem:[#allocation3 + $0x68] sm:$0xff] %vm1634_vm8, %v1565_v7 }
 0x254   : > { %v2175_v34 = vpop.permute.xlu1 %2174 }
 0x255   : > { %2244 = vst.msk [vmem:[#allocation3 + $0xd8] sm:$0xff] %vm2216_vm11, %v2175_v34  ;;  %v1759_v0 = vpop.permute.xlu0 %1758  ;;  %v2260_v10 = vld [vmem:[#allocation3 + $0x58] sm:$0xff] }
 0x256   : > { %1843 = vst.msk [vmem:[#allocation3 + $0x60] sm:$0xff] %vm1830_vm9, %v1759_v0  ;;  %3096 = vmatmul.mubr.msk.f32.gmra.mrb[10].mxu0 %vm2293_vm12, %v2260_v10 }
 0x258   : > { %v1597_v8 = vpop.permute.xlu1 %1596 }
 0x259   : > { %1664 = vst.msk [vmem:[#allocation3 + $0xe8] sm:$0xff] %vm1634_vm8, %v1597_v8  ;;  %v1761_v6 = vpop.permute.xlu0 %1760 }
 0x25a   : > { %1844 = vst.msk [vmem:[#allocation3 + $0x68] sm:$0xff] %vm1830_vm9, %v1761_v6 }
 0x25c   : > { %v1791_v12 = vpop.permute.xlu1 %1790  ;;  %v2276_v38 = vld [vmem:[#allocation3 + $0xd8] sm:$0xff] }
 0x25d   : > { %1859 = vst.msk [vmem:[#allocation3 + $0xe0] sm:$0xff] %vm1830_vm9, %v1791_v12  ;;  %3120 = vmatmul.mubr.msk.f32.gmra.mrb[10].mxu1 %vm2293_vm12, %v2276_v38  ;;  %v1952_v17 = vpop.permute.xlu0 %1951 }
 0x25e   : > { %2036 = vst.msk [vmem:[#allocation3 + $0x60] sm:$0xff] %vm2023_vm10, %v1952_v17 }
 0x260   : > { %v1793_v50 = vpop.permute.xlu1 %1792 }
 0x261   : > { %1860 = vst.msk [vmem:[#allocation3 + $0xe8] sm:$0xff] %vm1830_vm9, %v1793_v50  ;;  %v1374_v36 = vpop.permute.xlu0 %1373  ;;  %v3082_v59 = vpop.f32.mrb[0].mxu0 }
 0x262   : > { %1456 = vst.msk [vmem:[#allocation3 + $0x70] sm:$0xff] %vm1441_vm7, %v1374_v36  ;;  %v2466_v14 = vadd.f32 %v3082_v59, %v4296_v23  ;;  %v2460_v37 = vpop.f32.mrb[1].mxu0 }
 0x263   : > { %v2461_v39 = vadd.f32 %v4296_v23, %v2460_v37 }
 0x264   : > { %v1984_v45 = vpop.permute.xlu1 %1983  ;;  %2621 = vst.msk [vmem:[%s4304_s14 + $0x8] sm:$0xff] %vm2619_vm13, %v2466_v14 }
 0x265   : > { %2052 = vst.msk [vmem:[#allocation3 + $0xe0] sm:$0xff] %vm2023_vm10, %v1984_v45  ;;  %v1954_v41 = vpop.permute.xlu0 %1953 }
 0x266   : > { %2620 = vst.msk [vmem:[%s4304_s14] sm:$0xff] %vm2619_vm13, %v2461_v39 }
 0x267   : > { %2037 = vst.msk [vmem:[#allocation3 + $0x68] sm:$0xff] %vm2023_vm10, %v1954_v41 }
 0x268   : > { %v3106_v62 = vpop.f32.mrb[0].mxu1  ;;  %v1406_v42 = vpop.permute.xlu1 %1405 }
 0x269   : > { %v2546_v46 = vadd.f32 %v3106_v62, %v4296_v23  ;;  %1472 = vst.msk [vmem:[#allocation3 + $0xf0] sm:$0xff] %vm1441_vm7, %v1406_v42  ;;  %v2540_v25 = vpop.f32.mrb[1].mxu1  ;;  %v2145_v47 = vpop.permute.xlu0 %2144 }
 0x26a   : > { %v2541_v18 = vadd.f32 %v4296_v23, %v2540_v25  ;;  %2229 = vst.msk [vmem:[#allocation3 + $0x60] sm:$0xff] %vm2216_vm11, %v2145_v47 }
 0x26b   : > { %2637 = vst.msk [vmem:[%s4304_s14 + $0x88] sm:$0xff] %vm2619_vm13, %v2546_v46 }
 0x26c   : > { %2636 = vst.msk [vmem:[%s4304_s14 + $0x80] sm:$0xff] %vm2619_vm13, %v2541_v18  ;;  %v1986_v26 = vpop.permute.xlu1 %1985 }
 0x26d   : > { %2053 = vst.msk [vmem:[#allocation3 + $0xe8] sm:$0xff] %vm2023_vm10, %v1986_v26  ;;  %v1376_v53 = vpop.permute.xlu0 %1375 }
 0x26e   : > { %1457 = vst.msk [vmem:[#allocation3 + $0x78] sm:$0xff] %vm1441_vm7, %v1376_v53 }
 0x270   : > { %v2177_v54 = vpop.permute.xlu1 %2176 }
 0x271   : > { %2245 = vst.msk [vmem:[#allocation3 + $0xe0] sm:$0xff] %vm2216_vm11, %v2177_v54  ;;  %v1567_v32 = vpop.permute.xlu0 %1566  ;;  %v2261_v27 = vld [vmem:[#allocation3 + $0x60] sm:$0xff] }
 0x272   : > { %1649 = vst.msk [vmem:[#allocation3 + $0x70] sm:$0xff] %vm1634_vm8, %v1567_v32  ;;  %3098 = vmatprep.mubr.msk.f32.mxu0 %vm2293_vm12, %v2261_v27 }
 0x274   : > { %v1408_v19 = vpop.permute.xlu1 %1407 }
 0x275   : > { %1473 = vst.msk [vmem:[#allocation3 + $0xf8] sm:$0xff] %vm1441_vm7, %v1408_v19  ;;  %v2147_v48 = vpop.permute.xlu0 %2146 }
 0x276   : > { %2230 = vst.msk [vmem:[#allocation3 + $0x68] sm:$0xff] %vm2216_vm11, %v2147_v48 }
 0x278   : > { %v1599_v29 = vpop.permute.xlu1 %1598  ;;  %v2277_v22 = vld [vmem:[#allocation3 + $0xe0] sm:$0xff] }
 0x279   : > { %1665 = vst.msk [vmem:[#allocation3 + $0xf0] sm:$0xff] %vm1634_vm8, %v1599_v29  ;;  %3122 = vmatprep.mubr.msk.f32.mxu1 %vm2293_vm12, %v2277_v22  ;;  %v1569_v57 = vpop.permute.xlu0 %1568 }
 0x27a   : > { %1650 = vst.msk [vmem:[#allocation3 + $0x78] sm:$0xff] %vm1634_vm8, %v1569_v57 }
 0x27c   : > { %v2179_v13 = vpop.permute.xlu1 %2178 }
 0x27d   : > { %2246 = vst.msk [vmem:[#allocation3 + $0xe8] sm:$0xff] %vm2216_vm11, %v2179_v13  ;;  %v1763_v4 = vpop.permute.xlu0 %1762  ;;  %v2262_v60 = vld [vmem:[#allocation3 + $0x68] sm:$0xff] }
 0x27e   : > { %1845 = vst.msk [vmem:[#allocation3 + $0x70] sm:$0xff] %vm1830_vm9, %v1763_v4  ;;  %3099 = vmatmul.mubr.msk.f32.gmra.mrb[12].mxu0 %vm2293_vm12, %v2262_v60 }
 0x280   : > { %v1601_v61 = vpop.permute.xlu1 %1600 }
 0x281   : > { %1666 = vst.msk [vmem:[#allocation3 + $0xf8] sm:$0xff] %vm1634_vm8, %v1601_v61  ;;  %v1765_v21 = vpop.permute.xlu0 %1764 }
 0x282   : > { %1846 = vst.msk [vmem:[#allocation3 + $0x78] sm:$0xff] %vm1830_vm9, %v1765_v21 }
 0x284   : > { %v1795_v11 = vpop.permute.xlu1 %1794  ;;  %v2278_v16 = vld [vmem:[#allocation3 + $0xe8] sm:$0xff] }
 0x285   : > { %1861 = vst.msk [vmem:[#allocation3 + $0xf0] sm:$0xff] %vm1830_vm9, %v1795_v11  ;;  %3123 = vmatmul.mubr.msk.f32.gmra.mrb[12].mxu1 %vm2293_vm12, %v2278_v16  ;;  %v1956_v51 = vpop.permute.xlu0 %1955 }
 0x286   : > { %2038 = vst.msk [vmem:[#allocation3 + $0x70] sm:$0xff] %vm2023_vm10, %v1956_v51 }
 0x288   : > { %v1797_v3 = vpop.permute.xlu1 %1796 }
 0x289   : > { %1862 = vst.msk [vmem:[#allocation3 + $0xf8] sm:$0xff] %vm1830_vm9, %v1797_v3  ;;  %v1958_v52 = vpop.permute.xlu0 %1957  ;;  %v3085_v35 = vpop.f32.mrb[2].mxu0 }
 0x28a   : > { %2039 = vst.msk [vmem:[#allocation3 + $0x78] sm:$0xff] %vm2023_vm10, %v1958_v52  ;;  %v2476_v43 = vadd.f32 %v3085_v35, %v4296_v23  ;;  %v2470_v28 = vpop.f32.mrb[3].mxu0 }
 0x28b   : > { %v2471_v30 = vadd.f32 %v4296_v23, %v2470_v28 }
 0x28c   : > { %v1988_v44 = vpop.permute.xlu1 %1987  ;;  %2623 = vst.msk [vmem:[%s4304_s14 + $0x18] sm:$0xff] %vm2619_vm13, %v2476_v43 }
 0x28d   : > { %2054 = vst.msk [vmem:[#allocation3 + $0xf0] sm:$0xff] %vm2023_vm10, %v1988_v44  ;;  %v2149_v20 = vpop.permute.xlu0 %2148 }
 0x28e   : > { %2622 = vst.msk [vmem:[%s4304_s14 + $0x10] sm:$0xff] %vm2619_vm13, %v2471_v30 }
 0x28f   : > { %2231 = vst.msk [vmem:[#allocation3 + $0x70] sm:$0xff] %vm2216_vm11, %v2149_v20 }
 0x290   : > { %v3109_v31 = vpop.f32.mrb[2].mxu1  ;;  %v1990_v40 = vpop.permute.xlu1 %1989 }
 0x291   : > { %v2556_v5 = vadd.f32 %v3109_v31, %v4296_v23  ;;  %2055 = vst.msk [vmem:[#allocation3 + $0xf8] sm:$0xff] %vm2023_vm10, %v1990_v40  ;;  %v2550_v49 = vpop.f32.mrb[3].mxu1  ;;  %v2151_v55 = vpop.permute.xlu0 %2150 }
 0x292   : > { %v2551_v9 = vadd.f32 %v4296_v23, %v2550_v49  ;;  %2232 = vst.msk [vmem:[#allocation3 + $0x78] sm:$0xff] %vm2216_vm11, %v2151_v55 }
 0x293   : > { %2639 = vst.msk [vmem:[%s4304_s14 + $0x98] sm:$0xff] %vm2619_vm13, %v2556_v5 }
 0x294   : > { %2638 = vst.msk [vmem:[%s4304_s14 + $0x90] sm:$0xff] %vm2619_vm13, %v2551_v9  ;;  %v2181_v56 = vpop.permute.xlu1 %2180 }
 0x295   : > { %2247 = vst.msk [vmem:[#allocation3 + $0xf0] sm:$0xff] %vm2216_vm11, %v2181_v56 }
 0x296   : > { %v2263_v15 = vld [vmem:[#allocation3 + $0x70] sm:$0xff] }
 0x297   : > { %3101 = vmatprep.mubr.msk.f32.mxu0 %vm2293_vm12, %v2263_v15 }
 0x298   : > { %v2183_v24 = vpop.permute.xlu1 %2182 }
 0x299   : > { %2248 = vst.msk [vmem:[#allocation3 + $0xf8] sm:$0xff] %vm2216_vm11, %v2183_v24  ;;  %v2264_v58 = vld [vmem:[#allocation3 + $0x78] sm:$0xff] }
 0x29a   : > { %3102 = vmatmul.mubr.msk.f32.gmra.mrb[14].mxu0 %vm2293_vm12, %v2264_v58 }
 0x29c   : > { %v2279_v63 = vld [vmem:[#allocation3 + $0xf0] sm:$0xff] }
 0x29d   : > { %3125 = vmatprep.mubr.msk.f32.mxu1 %vm2293_vm12, %v2279_v63 }
 0x2a0   : > { %v2280_v1 = vld [vmem:[#allocation3 + $0xf8] sm:$0xff] }
 0x2a1   : > { %3126 = vmatmul.mubr.msk.f32.gmra.mrb[14].mxu1 %vm2293_vm12, %v2280_v1 }
 0x2b1   : > { %v3088_v33 = vpop.f32.mrb[4].mxu0 }
 0x2b2   : > { %v2486_v2 = vadd.f32 %v3088_v33, %v4296_v23  ;;  %v2480_v7 = vpop.f32.mrb[5].mxu0 }
 0x2b3   : > { %v2481_v34 = vadd.f32 %v4296_v23, %v2480_v7 }
 0x2b4   : > { %2625 = vst.msk [vmem:[%s4304_s14 + $0x28] sm:$0xff] %vm2619_vm13, %v2486_v2 }
 0x2b5   : > { %2624 = vst.msk [vmem:[%s4304_s14 + $0x20] sm:$0xff] %vm2619_vm13, %v2481_v34 }
 0x2b8   : > { %v3112_v0 = vpop.f32.mrb[4].mxu1 }
 0x2b9   : > { %v2566_v10 = vadd.f32 %v3112_v0, %v4296_v23  ;;  %v2560_v8 = vpop.f32.mrb[5].mxu1 }
 0x2ba   : > { %v2561_v6 = vadd.f32 %v4296_v23, %v2560_v8 }
 0x2bb   : > { %2641 = vst.msk [vmem:[%s4304_s14 + $0xa8] sm:$0xff] %vm2619_vm13, %v2566_v10 }
 0x2bc   : > { %2640 = vst.msk [vmem:[%s4304_s14 + $0xa0] sm:$0xff] %vm2619_vm13, %v2561_v6 }
 0x2d9   : > { %v3091_v12 = vpop.f32.mrb[6].mxu0 }
 0x2da   : > { %v2496_v38 = vadd.f32 %v3091_v12, %v4296_v23  ;;  %v2490_v17 = vpop.f32.mrb[7].mxu0 }
 0x2db   : > { %v2491_v50 = vadd.f32 %v4296_v23, %v2490_v17 }
 0x2dc   : > { %2627 = vst.msk [vmem:[%s4304_s14 + $0x38] sm:$0xff] %vm2619_vm13, %v2496_v38 }
 0x2dd   : > { %2626 = vst.msk [vmem:[%s4304_s14 + $0x30] sm:$0xff] %vm2619_vm13, %v2491_v50 }
 0x2e0   : > { %v3115_v36 = vpop.f32.mrb[6].mxu1 }
 0x2e1   : > { %v2576_v59 = vadd.f32 %v3115_v36, %v4296_v23  ;;  %v2570_v14 = vpop.f32.mrb[7].mxu1 }
 0x2e2   : > { %v2571_v37 = vadd.f32 %v4296_v23, %v2570_v14 }
 0x2e3   : > { %2643 = vst.msk [vmem:[%s4304_s14 + $0xb8] sm:$0xff] %vm2619_vm13, %v2576_v59 }
 0x2e4   : > { %2642 = vst.msk [vmem:[%s4304_s14 + $0xb0] sm:$0xff] %vm2619_vm13, %v2571_v37 }
 0x301   : > { %v3094_v39 = vpop.f32.mrb[8].mxu0 }
 0x302   : > { %v2506_v45 = vadd.f32 %v3094_v39, %v4296_v23  ;;  %v2500_v41 = vpop.f32.mrb[9].mxu0 }
 0x303   : > { %v2501_v62 = vadd.f32 %v4296_v23, %v2500_v41 }
 0x304   : > { %2629 = vst.msk [vmem:[%s4304_s14 + $0x48] sm:$0xff] %vm2619_vm13, %v2506_v45 }
 0x305   : > { %2628 = vst.msk [vmem:[%s4304_s14 + $0x40] sm:$0xff] %vm2619_vm13, %v2501_v62 }
 0x308   : > { %v3118_v42 = vpop.f32.mrb[8].mxu1 }
 0x309   : > { %v2586_v46 = vadd.f32 %v3118_v42, %v4296_v23  ;;  %v2580_v25 = vpop.f32.mrb[9].mxu1 }
 0x30a   : > { %v2581_v47 = vadd.f32 %v4296_v23, %v2580_v25 }
 0x30b   : > { %2645 = vst.msk [vmem:[%s4304_s14 + $0xc8] sm:$0xff] %vm2619_vm13, %v2586_v46 }
 0x30c   : > { %2644 = vst.msk [vmem:[%s4304_s14 + $0xc0] sm:$0xff] %vm2619_vm13, %v2581_v47 }
 0x329   : > { %v3097_v18 = vpop.f32.mrb[10].mxu0 }
 0x32a   : > { %v2516_v26 = vadd.f32 %v3097_v18, %v4296_v23  ;;  %v2510_v53 = vpop.f32.mrb[11].mxu0 }
 0x32b   : > { %v2511_v54 = vadd.f32 %v4296_v23, %v2510_v53 }
 0x32c   : > { %2631 = vst.msk [vmem:[%s4304_s14 + $0x58] sm:$0xff] %vm2619_vm13, %v2516_v26 }
 0x32d   : > { %2630 = vst.msk [vmem:[%s4304_s14 + $0x50] sm:$0xff] %vm2619_vm13, %v2511_v54 }
 0x330   : > { %v3121_v32 = vpop.f32.mrb[10].mxu1 }
 0x331   : > { %v2596_v27 = vadd.f32 %v3121_v32, %v4296_v23  ;;  %v2590_v19 = vpop.f32.mrb[11].mxu1 }
 0x332   : > { %v2591_v48 = vadd.f32 %v4296_v23, %v2590_v19 }
 0x333   : > { %2647 = vst.msk [vmem:[%s4304_s14 + $0xd8] sm:$0xff] %vm2619_vm13, %v2596_v27 }
 0x334   : > { %2646 = vst.msk [vmem:[%s4304_s14 + $0xd0] sm:$0xff] %vm2619_vm13, %v2591_v48 }
 0x351   : > { %v3100_v29 = vpop.f32.mrb[12].mxu0 }
 0x352   : > { %v2526_v22 = vadd.f32 %v3100_v29, %v4296_v23  ;;  %v2520_v57 = vpop.f32.mrb[13].mxu0 }
 0x353   : > { %v2521_v13 = vadd.f32 %v4296_v23, %v2520_v57 }
 0x354   : > { %2633 = vst.msk [vmem:[%s4304_s14 + $0x68] sm:$0xff] %vm2619_vm13, %v2526_v22 }
 0x355   : > { %2632 = vst.msk [vmem:[%s4304_s14 + $0x60] sm:$0xff] %vm2619_vm13, %v2521_v13 }
 0x358   : > { %v3124_v4 = vpop.f32.mrb[12].mxu1 }
 0x359   : > { %v2606_v60 = vadd.f32 %v3124_v4, %v4296_v23  ;;  %v2600_v61 = vpop.f32.mrb[13].mxu1 }
 0x35a   : > { %v2601_v21 = vadd.f32 %v4296_v23, %v2600_v61 }
 0x35b   : > { %2649 = vst.msk [vmem:[%s4304_s14 + $0xe8] sm:$0xff] %vm2619_vm13, %v2606_v60 }
 0x35c   : > { %2648 = vst.msk [vmem:[%s4304_s14 + $0xe0] sm:$0xff] %vm2619_vm13, %v2601_v21 }
 0x36d   : > { %v3103_v11 = vpop.f32.mrb[14].mxu0 }
 0x36e   : > { %v2536_v16 = vadd.f32 %v3103_v11, %v4296_v23  ;;  %v2530_v51 = vpop.f32.mrb[15].mxu0 }
 0x36f   : > { %v2531_v3 = vadd.f32 %v4296_v23, %v2530_v51 }
 0x370   : > { %2635 = vst.msk [vmem:[%s4304_s14 + $0x78] sm:$0xff] %vm2619_vm13, %v2536_v16 }
 0x371   : > { %2634 = vst.msk [vmem:[%s4304_s14 + $0x70] sm:$0xff] %vm2619_vm13, %v2531_v3 }
 0x374   : > { %v3127_v52 = vpop.f32.mrb[14].mxu1 }
 0x375   : > { %v2616_v35 = vadd.f32 %v3127_v52, %v4296_v23  ;;  %v2610_v43 = vpop.f32.mrb[15].mxu1 }
 0x376   : > { %v2611_v28 = vadd.f32 %v4296_v23, %v2610_v43 }
 0x377   : > { %2651 = vst.msk [vmem:[%s4304_s14 + $0xf8] sm:$0xff] %vm2619_vm13, %v2616_v35 }
 0x378   : > { %2650 = vst.msk [vmem:[%s4304_s14 + $0xf0] sm:$0xff] %vm2619_vm13, %v2611_v28 }
 0x379 PF: > { %s16_s23 = sadd.s32 1, %s3197_s23   ;;  %s4453_s21 = smov %s3193_s22 }
 0x37a   : > { %p13_p5 = scmp.ge.s32.totalorder %s16_s23, 4   ;;  %s4454_s22 = smov %s4456_s24 }
 0x37c   :  { %15 = sbr.rel (!%p13_p5) target bundleno = 2 (0x2), region = 88 }

</bundles_post_ra>
